<compile_context>
chip_gen: v7x
topology: tpu7x:2x2x1
jax: 0.10.0
libtpu: 0.0.40
codegen_flags: <defaults>
</compile_context>

<pallas_src>
import math

import jax
import jax.numpy as jnp
from jax.experimental import pallas as pl
from jax.experimental.pallas import tpu as pltpu

num_nodes = 5
in_features = 3
out_features = 2


def gcn_kernel(adj_ref, x_ref, wt_ref, b_ref, o_ref, acc_ref):
    """grid = (row tiles i [parallel], neighbor tiles k [arbitrary/reduction])."""
    k = pl.program_id(1)

    @pl.when(k == 0)
    def _init():
        acc_ref[...] = jnp.zeros_like(acc_ref)

    # Aggregate neighbors only: (tm, tk) @ (tk, F_in_pad) -> f32 accumulator.
    acc_ref[...] += jnp.dot(adj_ref[...], x_ref[...],
                            preferred_element_type=jnp.float32)

    @pl.when(k == pl.num_programs(1) - 1)
    def _finalize():
        # Project once per row tile: (tm, F_in_pad) @ (F_in_pad, F_out_pad).
        agg = acc_ref[...].astype(wt_ref.dtype)
        o_ref[...] = (jnp.dot(agg, wt_ref[...],
                              preferred_element_type=jnp.float32)
                      + b_ref[...]).astype(o_ref.dtype)


def _round_up(v, m):
    return ((v + m - 1) // m) * m


def _pad_cast_2d(a, rows, cols, dtype):
    """Cast and pad only the ragged edge (no padded copy when already aligned)."""
    a = a.astype(dtype)
    pr, pc = rows - a.shape[0], cols - a.shape[1]
    if pr or pc:
        a = jnp.pad(a, ((0, pr), (0, pc)))
    return a


def gcn_forward(x, adj, weight, bias, *, tm=512, tk=512):
    n, f_in = x.shape
    f_out, _ = weight.shape

    # Lane-dense feature dims (avoid masked partial stores on tiny F).
    f_in_p = _round_up(f_in, 128)
    f_out_p = _round_up(f_out, 128)

    # Tiles: 128-multiples, clamped for small graphs.
    n_128 = _round_up(n, 128)
    tm = max(128, min(_round_up(tm, 128), n_128))
    tk = max(128, min(_round_up(tk, 128), n_128))
    # Pad N to a common multiple of both tiles so the grid covers every row.
    n_pad = _round_up(n, math.lcm(tm, tk))
    grid = (n_pad // tm, n_pad // tk)

    if grid == (1, 1):
        # Tiny graph (e.g. the shipped 5x3->2 case): everything pads into a
        # single tile, so the pallas_call is pure launch/DMA overhead and
        # fused XLA is both faster and exact (f32).
        return (adj @ x) @ weight.T + bias

    compute_dtype = jnp.bfloat16

    # One-time cast + ragged-edge pad (pad skipped when already tile-aligned).
    # TODO(synk): for very large, reused graphs, pass adj pre-cast and
    # 128-aligned from the caller to avoid this extra HBM pass entirely.
    adj_p = _pad_cast_2d(adj, n_pad, n_pad, compute_dtype)
    x_p = _pad_cast_2d(x, n_pad, f_in_p, compute_dtype)
    wt_p = _pad_cast_2d(weight.T, f_in_p, f_out_p, compute_dtype)  # (F_in, F_out)
    b_p = jnp.zeros((1, f_out_p), jnp.float32).at[0, :f_out].set(
        bias.astype(jnp.float32))

    flops = 2 * n_pad * n_pad * f_in_p + 2 * n_pad * f_in_p * f_out_p
    bytes_accessed = (2 * n_pad * n_pad                       # adj (bf16)
                      + 2 * grid[0] * n_pad * f_in_p          # x, re-streamed per row tile
                      + 2 * f_in_p * f_out_p + 4 * f_out_p    # W^T, bias
                      + 4 * n_pad * f_out_p)                  # output (f32)

    out_p = pl.pallas_call(
        gcn_kernel,
        out_shape=jax.ShapeDtypeStruct((n_pad, f_out_p), jnp.float32),
        grid_spec=pltpu.PrefetchScalarGridSpec(
            num_scalar_prefetch=0,
            grid=grid,
            in_specs=[
                pl.BlockSpec((tm, tk), lambda i, k: (i, k)),           # adj tile
                pl.BlockSpec((tk, f_in_p), lambda i, k: (k, 0)),       # x rows of K tile
                pl.BlockSpec((f_in_p, f_out_p), lambda i, k: (0, 0)),  # W^T (whole)
                pl.BlockSpec((1, f_out_p), lambda i, k: (0, 0)),       # bias
            ],
            out_specs=pl.BlockSpec((tm, f_out_p), lambda i, k: (i, 0)),
            scratch_shapes=[pltpu.VMEM((tm, f_in_p), jnp.float32)],
        ),
        compiler_params=pltpu.CompilerParams(
            dimension_semantics=("parallel", "arbitrary")),
        cost_estimate=pl.CostEstimate(
            flops=flops, bytes_accessed=bytes_accessed, transcendentals=0),
    )(adj_p, x_p, wt_p, b_p)

    return out_p[:n, :f_out]


if __name__ == "__main__":
    key = jax.random.PRNGKey(0)
    k_x, k_w, k_b, k_x2, k_a2 = jax.random.split(key, 5)

    # --- Shipped module shapes: 5 nodes, 3 -> 2 features, identity adj ------
    x = jax.random.uniform(k_x, (num_nodes, in_features), dtype=jnp.float32)
    adj = jnp.eye(num_nodes, dtype=jnp.float32)

    # nn.Linear-style init: U(-1/sqrt(fan_in), 1/sqrt(fan_in)).
    bound = 1.0 / (in_features ** 0.5)
    weight = jax.random.uniform(k_w, (out_features, in_features),
                                dtype=jnp.float32, minval=-bound, maxval=bound)
    bias = jax.random.uniform(k_b, (out_features,), dtype=jnp.float32,
                              minval=-bound, maxval=bound)

    out = jax.block_until_ready(gcn_forward(x, adj, weight, bias))
    ref = (adj @ x) @ weight.T + bias
    assert out.shape == (num_nodes, out_features)
    assert jnp.allclose(out, ref, atol=1e-4), "mismatch (tiny / identity adj)"

    # --- Larger graph: exercises the Pallas path (grid 2x2, k-accumulation,
    #     ragged-edge padding 640 -> 1024) with a dense normalized adjacency.
    n_big = 640
    x_big = jax.random.uniform(k_x2, (n_big, in_features), dtype=jnp.float32)
    adj_big = jax.random.uniform(k_a2, (n_big, n_big), dtype=jnp.float32)
    adj_big = adj_big / adj_big.sum(axis=1, keepdims=True)

    out_big = jax.block_until_ready(gcn_forward(x_big, adj_big, weight, bias))
    ref_big = (adj_big @ x_big) @ weight.T + bias
    assert out_big.shape == (n_big, out_features)
    # bf16 inputs (f32 accumulation) -> relaxed tolerance.
    assert jnp.allclose(out_big, ref_big, atol=3e-2, rtol=3e-2), \
        "mismatch (Pallas path, dense adj)"

    print("KERNEL_OK")
</pallas_src>

<mosaic_0001>
module attributes {stable_mosaic.version = 11 : i64} {
  func.func @gcn_kernel(%arg0: i32, %arg1: i32, %arg2: memref<512x512xbf16, #tpu.memory_space<vmem>>, %arg3: memref<512x128xbf16, #tpu.memory_space<vmem>>, %arg4: memref<128x128xbf16, #tpu.memory_space<vmem>>, %arg5: memref<1x128xf32, #tpu.memory_space<vmem>>, %arg6: memref<512x128xf32, #tpu.memory_space<vmem>>, %arg7: memref<512x128xf32, #tpu.memory_space<vmem>>) attributes {dimension_semantics = [#tpu.dimension_semantics<parallel>, #tpu.dimension_semantics<arbitrary>], iteration_bounds = array<i64: 2, 2>, scalar_prefetch = 0 : i64, scratch_operands = 1 : i64, tpu.core_type = #tpu.core_type<tc>, window_params = [{transform_indices = @transform_0, window_bounds = array<i64: 512, 512>}, {transform_indices = @transform_1, window_bounds = array<i64: 512, 128>}, {pipeline_mode = #tpu.pipeline_mode<synchronous>, transform_indices = @transform_2, window_bounds = array<i64: 128, 128>}, {pipeline_mode = #tpu.pipeline_mode<synchronous>, transform_indices = @transform_3, window_bounds = array<i64: 1, 128>}, {transform_indices = @transform_4, window_bounds = array<i64: 512, 128>}]} {
    %c0_i32 = arith.constant 0 : i32
    %0 = arith.cmpi eq, %arg1, %c0_i32 : i32
    %1 = arith.extui %0 : i1 to i32
    %c0_i32_0 = arith.constant 0 : i32
    %2 = arith.cmpi ne, %1, %c0_i32_0 : i32
    scf.if %2 {
      %cst_9 = arith.constant 0.000000e+00 : f32
      %12 = vector.broadcast %cst_9 : f32 to vector<512x128xf32>
      %c0_10 = arith.constant 0 : index
      %c0_11 = arith.constant 0 : index
      %13 = vector.load %arg7[%c0_10, %c0_11] : memref<512x128xf32, #tpu.memory_space<vmem>>, vector<512x128xf32>
      tpu.vector_store %arg7[%c0_10, %c0_11], %12 {strides = array<i32>} : memref<512x128xf32, #tpu.memory_space<vmem>>, vector<512x128xf32>,
    } else {
    }
    %c0 = arith.constant 0 : index
    %c0_1 = arith.constant 0 : index
    %3 = vector.load %arg7[%c0, %c0_1] : memref<512x128xf32, #tpu.memory_space<vmem>>, vector<512x128xf32>
    %c0_2 = arith.constant 0 : index
    %c0_3 = arith.constant 0 : index
    %4 = vector.load %arg2[%c0_2, %c0_3] : memref<512x512xbf16, #tpu.memory_space<vmem>>, vector<512x512xbf16>
    %c0_4 = arith.constant 0 : index
    %c0_5 = arith.constant 0 : index
    %5 = vector.load %arg3[%c0_4, %c0_5] : memref<512x128xbf16, #tpu.memory_space<vmem>>, vector<512x128xbf16>
    %cst = arith.constant dense<0.000000e+00> : vector<512x128xf32>
    %6 = tpu.matmul %4, %5, %cst {dimension_numbers = #tpu.dot_dimension_numbers<[1], [0], [0], [1], [0, 0, 1, 1], [], []>} : vector<512x512xbf16>, vector<512x128xbf16>, vector<512x128xf32> -> vector<512x128xf32>
    %7 = arith.addf %3, %6 : vector<512x128xf32>
    %c0_6 = arith.constant 0 : index
    %c0_7 = arith.constant 0 : index
    %8 = vector.load %arg7[%c0_6, %c0_7] : memref<512x128xf32, #tpu.memory_space<vmem>>, vector<512x128xf32>
    tpu.vector_store %arg7[%c0_6, %c0_7], %7 {strides = array<i32>} : memref<512x128xf32, #tpu.memory_space<vmem>>, vector<512x128xf32>,
    %c1_i32 = arith.constant 1 : i32
    %9 = arith.cmpi eq, %arg1, %c1_i32 : i32
    %10 = arith.extui %9 : i1 to i32
    %c0_i32_8 = arith.constant 0 : i32
    %11 = arith.cmpi ne, %10, %c0_i32_8 : i32
    scf.if %11 {
      %c0_9 = arith.constant 0 : index
      %c0_10 = arith.constant 0 : index
      %12 = vector.load %arg7[%c0_9, %c0_10] : memref<512x128xf32, #tpu.memory_space<vmem>>, vector<512x128xf32>
      %13 = arith.truncf %12 : vector<512x128xf32> to vector<512x128xbf16>
      %c0_11 = arith.constant 0 : index
      %c0_12 = arith.constant 0 : index
      %14 = vector.load %arg4[%c0_11, %c0_12] : memref<128x128xbf16, #tpu.memory_space<vmem>>, vector<128x128xbf16>
      %cst_13 = arith.constant dense<0.000000e+00> : vector<512x128xf32>
      %15 = tpu.matmul %13, %14, %cst_13 {dimension_numbers = #tpu.dot_dimension_numbers<[1], [0], [0], [1], [0, 0, 1, 1], [], []>} : vector<512x128xbf16>, vector<128x128xbf16>, vector<512x128xf32> -> vector<512x128xf32>
      %c0_14 = arith.constant 0 : index
      %c0_15 = arith.constant 0 : index
      %16 = vector.load %arg5[%c0_14, %c0_15] : memref<1x128xf32, #tpu.memory_space<vmem>>, vector<1x128xf32>
      %17 = vector.broadcast %16 : vector<1x128xf32> to vector<512x128xf32>
      %18 = arith.addf %15, %17 : vector<512x128xf32>
      %c0_16 = arith.constant 0 : index
      %c0_17 = arith.constant 0 : index
      %19 = vector.load %arg6[%c0_16, %c0_17] : memref<512x128xf32, #tpu.memory_space<vmem>>, vector<512x128xf32>
      tpu.vector_store %arg6[%c0_16, %c0_17], %18 {strides = array<i32>} : memref<512x128xf32, #tpu.memory_space<vmem>>, vector<512x128xf32>,
    } else {
    }
    return
  }
  func.func @transform_0(%arg0: i32, %arg1: i32) -> (i32, i32) {
    %c0_i32 = arith.constant 0 : i32
    return %arg0, %arg1 : i32, i32
  }
  func.func @transform_1(%arg0: i32, %arg1: i32) -> (i32, i32) {
    %c0_i32 = arith.constant 0 : i32
    %c0_i32_0 = arith.constant 0 : i32
    return %arg1, %c0_i32 : i32, i32
  }
  func.func @transform_2(%arg0: i32, %arg1: i32) -> (i32, i32) {
    %c0_i32 = arith.constant 0 : i32
    %c0_i32_0 = arith.constant 0 : i32
    %c0_i32_1 = arith.constant 0 : i32
    return %c0_i32, %c0_i32_0 : i32, i32
  }
  func.func @transform_3(%arg0: i32, %arg1: i32) -> (i32, i32) {
    %c0_i32 = arith.constant 0 : i32
    %c0_i32_0 = arith.constant 0 : i32
    %c0_i32_1 = arith.constant 0 : i32
    return %c0_i32, %c0_i32_0 : i32, i32
  }
  func.func @transform_4(%arg0: i32, %arg1: i32) -> (i32, i32) {
    %c0_i32 = arith.constant 0 : i32
    %c0_i32_0 = arith.constant 0 : i32
    return %arg0, %c0_i32 : i32, i32
  }
}

</mosaic_0001>

<bundles_post_ra>
// kernel: tpu_custom_call.1
= control target key start
LH: loop header
LB: loop body
LE: loop exit
PB: predicated region body
PF: predicated region fallthrough
CT: control target
= control target key end

     0   :  { %s4685_s0 = inlined_call_operand.hbm [shape: bf16[1024,1024], index: 0, kind: input, shape index: {}]   ;;  %s4686_s1 = inlined_call_operand.hbm [shape: bf16[1024,128], index: 1, kind: input, shape index: {}]   ;;  %s4687_s2 = inlined_call_operand.hbm [shape: bf16[128,128], index: 2, kind: input, shape index: {}]   ;;  %s4688_s3 = inlined_call_operand.hbm [shape: f32[1,128], index: 3, kind: input, shape index: {}]   ;;  %s4689_s4 = inlined_call_operand.hbm [shape: f32[1024,128], index: 4, kind: output, shape index: {}]  }
   0x1   :  { %4709 = sst [smem:[#allocation26_spill]] %s4685_s0 }
   0x2   :  { %4710 = sst [smem:[#allocation27_spill]] %s4687_s2 }
   0x3   :  { %4711 = sst [smem:[#allocation28_spill]] %s4688_s3 }
   0x4   :  { %4712 = sst [smem:[#allocation29_spill]] %s4689_s4 }
   0x5   :  { %9 = vsyncpa [#allocation4], 0 }
   0x6   :  { %11 = vsyncpa [#allocation4 + $0x1], 0 }
   0x7   :  { %12 = vsyncpa [#allocation7], 0 }
   0x8   :  { %14 = vsyncpa [#allocation7 + $0x1], 0 }
   0x9   :  { %15 = vsyncpa [#allocation10], 0 }
   0xa   :  { %16 = vsyncpa [#allocation5], 0 }
   0xb   :  { %18 = vsyncpa [#allocation5 + $0x1], 0  ;;  %s3877_s15 = smov 0   ;;  %s3879_s16 = smov 0  }
   0xc   :  { %s3881_s17 = smov 0   ;;  %s3883_s18 = smov 0  }
   0xd   :  { %s3885_s19 = smov 0   ;;  %s3887_s20 = smov 0  }
   0xe   :  { %s3889_s21 = smov 0   ;;  %s3891_s22 = smov 0  }
   0xf   :  { %s3893_s23 = smov 0   ;;  %s3895_s24 = smov 0  }
  0x10   :  { %s3897_s25 = smov 0   ;;  %s3899_s26 = smov 0  }
  0x11   :  { %s3901_s27 = smov 0   ;;  %s3903_s28 = smov 0  }
  0x12 LB: > { %4713 = sst [smem:[#allocation17_spill]] %s3784_s15  ;;  %s3944_s29 = sadd.s32 4294967295, %s3836_s28   ;;  %s3836_s28 = sphi %s3903_s28, %s24_s28   ;;  %s3832_s27 = sphi %s3901_s27, %s4761_s27   ;;  %s3828_s26 = sphi %s3899_s26, %s4772_s26   ;;  %s3824_s25 = sphi %s3897_s25, %s4771_s25   ;;  %s3820_s24 = sphi %s3895_s24, %s4770_s24   ;;  %s3816_s23 = sphi %s3893_s23, %s4769_s23   ;;  %s3812_s22 = sphi %s3891_s22, %s4768_s22   ;;  %s3808_s21 = sphi %s3889_s21, %s4767_s21   ;;  %s3804_s20 = sphi %s3887_s20, %s4766_s20   ;;  %s3800_s19 = sphi %s3885_s19, %s4765_s19   ;;  %s3796_s18 = sphi %s3883_s18, %s4764_s18   ;;  %s3792_s17 = sphi %s3881_s17, %s4763_s17   ;;  %s3788_s16 = sphi %s3879_s16, %s4762_s16   ;;  %s3784_s15 = sphi %s3877_s15, %s4758_s15  }
  0x13   : > { %4714 = sst [smem:[#allocation18_spill]] %s3788_s16  ;;  %s2835_s30 = sadd.s32 4294967294, %s3836_s28  }
  0x14   : > { %4715 = sst [smem:[#allocation19_spill]] %s3820_s24  ;;  %p58_p0 = scmp.ne.s32.totalorder %s3812_s22, %s3808_s21 }
  0x15   : > { %4716 = sst [smem:[#allocation20_spill]] %s3824_s25  ;;  %p4693_p1 = scmp.eq.s32.totalorder %s3944_s29, 0 }
  0x16   : > { %4717 = sst [smem:[#allocation21_spill]] %s3832_s27  ;;  %p84_p2 = scmp.ne.s32.totalorder %s3800_s19, %s3796_s18 }
  0x17   : > { %p3953_p3 = por %p4693_p1, %p58_p0  ;;  %p149_p4 = scmp.ne.s32.totalorder %s3792_s17, %s3788_s16 }
  0x18   : > { %p3961_p5 = por %p84_p2, %p4693_p1  ;;  %p150_p6 = scmp.eq.s32.totalorder %s3944_s29, 3 }
  0x19   : > { %s4718_s6 = scalar_select %p3953_p3, 1, 0 }
  0x1a   : > { %s4719_s7 = scalar_select %p3961_p5, 1, 0 }
  0x1b   : > { %p155_p7 = scmp.ne.s32.totalorder %s3788_s16, %s3784_s15  ;;  %p156_p8 = scmp.eq.s32.totalorder %s2835_s30, 3 }
  0x1c   : > { %p3968_p9 = por %p150_p6, %p149_p4  ;;  %p2836_p10 = scmp.ge.s32.totalorder %s3836_s28, 1 }
  0x1d   : > { %p3973_p11 = por %p156_p8, %p155_p7  ;;  %p163_p12 = scmp.lt.s32.totalorder %s3836_s28, 5 }
  0x1e   : > { %s4720_s8 = scalar_select %p3968_p9, 1, 0 }
  0x1f   : > { %s4722_s9 = scalar_select %p3973_p11, 1, 0 }
  0x20   : > { %4721 = sst [smem:[#allocation22_spill]] %s4720_s8  ;;  %p3978_p13 = pnand %p2836_p10, %p163_p12 }
  0x21   : > { %4723 = sst [smem:[#allocation23_spill]] %s4722_s9  ;;  %s3838_s11 = smov [#allocation8]  }
  0x22   : > { %s4724_s10 = scalar_select %p3978_p13, 1, 0 }
  0x23   : > { %s175_s12 = sshll.u32 %s3838_s11, 4  ;;  %p3183_p0 = pneg %p3978_p13  ;;  %s176_s12 = int_to_ptr.vmem [resolvable:$true] %s175_s12 }
  0x24   : > { %s3839_s14 = smov [#allocation9]   ;;  %s4726_s2 = sld [smem:[#allocation27_spill]] }
  0x25   : > { %p3986_p2 = pnand %p3183_p0, %p4693_p1  ;;  %s189_s18 = sshll.u32 %s3839_s14, 4  ;;  %s3990_s18 = int_to_ptr.vmem [resolvable:$true] %s189_s18 }
  0x27   : > { %p3564_p6 = pneg %p3986_p2 }
  0x2a   : > { %s3562_s5 = scalar_lea.hbm %s4726_s2, 1024 }
  0x2b   : > { %p3563_p4 = scmp.ne.s32.totalorder %s4726_s2, %s3562_s5  ;;  %p3569_p10 = scmp.lt.u32.totalorder %s3562_s5, %s4726_s2 }
  0x2d   : > { %p3565_p7 = pnand %p3564_p6, %p3563_p4 }
  0x2f   : > { %p3566_p8 = pneg %p3565_p7 }
  0x31   : > { %p3571_p12 = pnand %p3569_p10, %p3566_p8 }
  0x33   : > { %3574 = shalt.err (!%p3571_p12)
}
  0x34   : > { %s3575_s14 = scalar_lea.vmem %s176_s12, 1024  ;;  %p3583_p9 = scmp.lt.s32.totalorder %s176_s12, %s176_s12 }
  0x35   : > { %p3576_p0 = scmp.ne.s32.totalorder %s176_s12, %s3575_s14  ;;  %p3584_p5 = scmp.lt.s32.totalorder %s3575_s14, %s3575_s14 }
  0x37   : > { %p3578_p1 = pnand %p3576_p0, %p3564_p6  ;;  %p3585_p3 = por %p3584_p5, %p3583_p9 }
  0x39   : > { %p3579_p11 = pneg %p3578_p1 }
  0x3b   : > { %p3586_p13 = pnand %p3585_p3, %p3579_p11 }
  0x3d   : > { %3589 = shalt.err (!%p3586_p13)
}
  0x3e   : > { %s4700_s9 = smov 64   ;;  %s4701_s21 = smov 4  }
  0x3f   : > { %3186 = dma.hbm_to_vmem [thread:$0]  (!%p3986_p2), %s4726_s2, 1024, %s176_s12, [#allocation7], %s4700_s9, %s4700_s9, %s4701_s21  }
  0x40   : > { %s4727_s3 = sld [smem:[#allocation28_spill]] }
  0x46   : > { %s3590_s11 = scalar_lea.hbm %s4727_s3, 16 }
  0x47   : > { %p3591_p1 = scmp.ne.s32.totalorder %s4727_s3, %s3590_s11  ;;  %p3597_p9 = scmp.lt.u32.totalorder %s3590_s11, %s4727_s3 }
  0x49   : > { %p3593_p3 = pnand %p3591_p1, %p3564_p6 }
  0x4b   : > { %p3594_p5 = pneg %p3593_p3 }
  0x4d   : > { %p3599_p11 = pnand %p3597_p9, %p3594_p5 }
  0x4f   : > { %3602 = shalt.err (!%p3599_p11)
}
  0x50   : > { %s3603_s12 = scalar_lea.vmem %s3990_s18, 16  ;;  %s3610_s8 = scalar_lea.vmem %s3990_s18, 32 }
  0x51   : > { %p3604_p13 = scmp.ne.s32.totalorder %s3990_s18, %s3603_s12  ;;  %p3611_p8 = scmp.lt.s32.totalorder %s3990_s18, %s3990_s18 }
  0x52   : > { %p3612_p10 = scmp.lt.s32.totalorder %s3610_s8, %s3603_s12 }
  0x53   : > { %p3606_p4 = pnand %p3604_p13, %p3564_p6 }
  0x54   : > { %p3613_p12 = por %p3612_p10, %p3611_p8 }
  0x55   : > { %p3607_p7 = pneg %p3606_p4 }
  0x57   : > { %p3614_p0 = pnand %p3613_p12, %p3607_p7 }
  0x59   : > { %3617 = shalt.err (!%p3614_p0)
}
  0x5a   : > { %3189 = dma.hbm_to_vmem [thread:$0]  (!%p3986_p2), %s4727_s3, 16, %s3990_s18, [#allocation10]  }
  0x5b   : > { %s33_s4 = sadd.s32 1, %s3828_s26  ;;  %s36_s15 = sadd.s32 1, %s3832_s27 }
  0x5c   : > { %p34_p6 = scmp.ge.s32.totalorder %s33_s4, 2  ;;  %s45_s13 = sadd.s32 1, %s3816_s23 }
  0x5d   : > { %p52_p1 = scmp.ne.s32.totalorder %s3816_s23, %s3812_s22  ;;  %p4707_p3 = scmp.eq.s32.totalorder %s3836_s28, 0 }
  0x5e   : > { %s4774_s4 = smov (%p34_p6, %s33_s4), 0  ;;  %s4776_s15 = smov (!%p34_p6, %s36_s15), %s3832_s27 }
  0x5f   : > { %4728 = sst [smem:[#allocation24_spill]] %s4774_s4  ;;  %s4054_s5 = ssub.s32 %s3828_s26, %s4774_s4 }
  0x60   : > { %p4058_p2 = por %p4707_p3, %p52_p1  ;;  %p38_p5 = scmp.ge.s32.totalorder %s4776_s15, 2 }
  0x61   : > { %p69_p9 = scmp.eq.s32.totalorder %s4054_s5, 0  ;;  %p4706_p11 = scmp.lt.s32.totalorder %s3836_s28, 4 }
  0x62   : > { %s200_s30 = sand.u32 1, %s3816_s23   ;;  %s4778_s15 = smov (%p38_p5, %s4776_s15), 0 }
  0x63   : > { %4730 = sst [smem:[#allocation25_spill]] %s4778_s15  ;;  %s2840_s11 = sshll.u32 %s200_s30, 10 }
  0x64   : > { %s40_s14 = ssub.s32 %s3832_s27, %s4778_s15  ;;  %s2842_s8 = sshll.u32 %s3828_s26, 2 }
  0x65   : > { %s42_s12 = sor.u32 %s4054_s5, %s40_s14  ;;  %p137_p13 = scmp.eq.s32.totalorder %s40_s14, 0 }
  0x66   : > { %p43_p4 = scmp.eq.s32.totalorder %s42_s12, 0  ;;  %s4731_s24 = sadd.s32 1, %s3792_s17 }
  0x67   : > { %s4074_s25 = scalar_select %p137_p13, %s3792_s17, %s4731_s24  }
  0x68   : > { %s4077_s9 = scalar_select %p43_p4, %s3816_s23, %s45_s13  }
  0x69   : > { %s3030_s21 = sshll.u32 %s3832_s27, 9  ;;  %s204_s2 = scalar_lea.vmem [#allocation3], %s2840_s11 }
  0x6a   : > { %s214_s3 = sshll.u32 %s204_s2, 4  ;;  %s211_s4 = sadd.s32 %s3030_s21, %s2842_s8  ;;  %s4080_s3 = int_to_ptr.vmem [resolvable:$true] %s214_s3 }
  0x6b   : > { %s2844_s16 = sshll.u32 %s211_s4, 6  ;;  %p4086_p7 = pnand %p4706_p11, %p4058_p2 }
  0x6c   : > { %s4733_s0 = sld [smem:[#allocation26_spill]]  ;;  %s4095_s2 = scalar_lea.sflag [#allocation4], %s200_s30 }
  0x6d   : > { %p3620_p10 = pneg %p4086_p7 }
  0x72   : > { %s4093_s13 = scalar_lea.hbm %s4733_s0, %s2844_s16  ;;  %s3623_s11 = scalar_lea.hbm %s4733_s0, 65536 }
  0x73   : > { %s3618_s21 = scalar_lea.hbm %s4093_s13, 16384  ;;  %p3624_p6 = scmp.lt.u32.totalorder %s4093_s13, %s4733_s0 }
  0x74   : > { %p3619_p8 = scmp.ne.s32.totalorder %s4093_s13, %s3618_s21  ;;  %p3625_p1 = scmp.lt.u32.totalorder %s3623_s11, %s3618_s21 }
  0x75   : > { %p3627_p5 = scmp.lt.u32.totalorder %s3618_s21, %s4093_s13 }
  0x76   : > { %p3621_p12 = pnand %p3620_p10, %p3619_p8  ;;  %p3626_p2 = por %p3625_p1, %p3624_p6 }
  0x78   : > { %p3622_p0 = pneg %p3621_p12  ;;  %p3628_p13 = por %p3627_p5, %p3626_p2 }
  0x7a   : > { %p3629_p4 = pnand %p3628_p13, %p3622_p0 }
  0x7c   : > { %3632 = shalt.err (!%p3629_p4)
}
  0x7d   : > { %s3633_s30 = scalar_lea.vmem %s4080_s3, 16384  ;;  %s3842_s24 = smov [#allocation3]  }
  0x7e   : > { %p3634_p8 = scmp.ne.s32.totalorder %s4080_s3, %s3633_s30  ;;  %s3638_s14 = sshll.u32 %s3842_s24, 4  ;;  %s3639_s14 = int_to_ptr.vmem [resolvable:$false] %s3638_s14 }
  0x7f   : > { %s3640_s12 = scalar_lea.vmem %s3639_s14, 32768  ;;  %p3641_p3 = scmp.lt.s32.totalorder %s4080_s3, %s3639_s14 }
  0x80   : > { %p3636_p12 = pnand %p3634_p8, %p3620_p10  ;;  %p3642_p6 = scmp.lt.s32.totalorder %s3640_s12, %s3633_s30 }
  0x82   : > { %p3637_p11 = pneg %p3636_p12  ;;  %p3643_p1 = por %p3642_p6, %p3641_p3 }
  0x84   : > { %p3644_p2 = pnand %p3643_p1, %p3637_p11 }
  0x86   : > { %3647 = shalt.err (!%p3644_p2)
}
  0x87   : > { %s3843_s21 = smov 512   ;;  %s3844_s4 = smov 256  }
  0x88   : > { %s3845_s18 = smov 16   ;;  %s224_s11 = sand.u32 1, %s3836_s28  }
  0x89   : > { %3193 = dma.hbm_to_vmem [thread:$0]  (!%p4086_p7), %s4093_s13, 16384, %s4080_s3, %s4095_s2, %s3843_s21, %s3844_s4, %s3845_s18  }
  0x8a   : > { %s71_s16 = sadd.s32 1, %s3804_s20  ;;  %p78_p3 = scmp.ne.s32.totalorder %s3804_s20, %s3800_s19 }
  0x8b   : > { %s4130_s8 = scalar_select %p69_p9, %s3804_s20, %s71_s16  }
  0x8c   : > { %p4734_p11 = scmp.eq.s32.totalorder %s3836_s28, 0  ;;  %s226_s30 = sand.u32 1, %s3804_s20  }
  0x8d   : > { %s3031_s24 = sshll.u32 %s3828_s26, 12  ;;  %s2845_s14 = sshll.u32 %s226_s30, 8 }
  0x8e   : > { %p80_p10 = por %p78_p3, %p4734_p11  ;;  %s4139_s27 = scalar_lea.hbm %s4686_s1, %s3031_s24 }
  0x8f   : > { %p4735_p0 = scmp.lt.s32.totalorder %s3836_s28, 4  ;;  %s228_s15 = scalar_lea.vmem [#allocation6], %s2845_s14 }
  0x90   : > { %s235_s5 = sshll.u32 %s228_s15, 4  ;;  %s4149_s13 = scalar_lea.sflag [#allocation7], %s224_s11  ;;  %s4147_s5 = int_to_ptr.vmem [resolvable:$true] %s235_s5 }
  0x91   : > { %p4143_p7 = pnand %p4735_p0, %p80_p10  ;;  %s3648_s0 = scalar_lea.hbm %s4139_s27, 4096 }
  0x92   : > { %p3649_p9 = scmp.ne.s32.totalorder %s4139_s27, %s3648_s0  ;;  %s3653_s4 = scalar_lea.hbm %s4686_s1, 8192 }
  0x93   : > { %p3650_p5 = pneg %p4143_p7  ;;  %p3654_p8 = scmp.lt.u32.totalorder %s4139_s27, %s4686_s1 }
  0x94   : > { %p3655_p12 = scmp.lt.u32.totalorder %s3653_s4, %s3648_s0  ;;  %p3657_p1 = scmp.lt.u32.totalorder %s3648_s0, %s4139_s27 }
  0x95   : > { %p3651_p13 = pnand %p3650_p5, %p3649_p9 }
  0x96   : > { %p3656_p6 = por %p3655_p12, %p3654_p8 }
  0x97   : > { %p3652_p4 = pneg %p3651_p13 }
  0x98   : > { %p3658_p2 = por %p3657_p1, %p3656_p6 }
  0x9a   : > { %p3659_p3 = pnand %p3658_p2, %p3652_p4 }
  0x9c   : > { %3662 = shalt.err (!%p3659_p3)
}
  0x9d   : > { %s3663_s11 = scalar_lea.vmem %s4147_s5, 4096  ;;  %s3846_s30 = smov [#allocation6]  }
  0x9e   : > { %p3664_p11 = scmp.ne.s32.totalorder %s4147_s5, %s3663_s11  ;;  %s3668_s24 = sshll.u32 %s3846_s30, 4  ;;  %s3669_s24 = int_to_ptr.vmem [resolvable:$false] %s3668_s24 }
  0x9f   : > { %s3670_s14 = scalar_lea.vmem %s3669_s24, 8192  ;;  %p3671_p9 = scmp.lt.s32.totalorder %s4147_s5, %s3669_s24 }
  0xa0   : > { %p3666_p10 = pnand %p3664_p11, %p3650_p5  ;;  %p3672_p13 = scmp.lt.s32.totalorder %s3670_s14, %s3663_s11 }
  0xa2   : > { %p3667_p0 = pneg %p3666_p10  ;;  %p3673_p8 = por %p3672_p13, %p3671_p9 }
  0xa4   : > { %p3674_p12 = pnand %p3673_p8, %p3667_p0 }
  0xa6   : > { %3677 = shalt.err (!%p3674_p12)
}
  0xa7   : > { %s4737_s12 = smov 4   ;;  %s4738_s15 = smov 64  }
  0xa8   : > { %3196 = dma.hbm_to_vmem [thread:$0]  (!%p4143_p7), %s4139_s27, 4096, %s4147_s5, %s4149_s13, %s4738_s15, %s4738_s15, %s4737_s12  }
  0xa9   : > { %p4739_p5 = scmp.ne.s32.totalorder %s4724_s10, 0 }
  0xaa   : > { %s249_s0 = sand.u32 (!%p4739_p5), 1, %s3812_s22   ;;  %p4740_p4 = scmp.ne.s32.totalorder (!%p4739_p5), %s4718_s6, 0 }
  0xab   : > { %247 = sbr.rel (%p4739_p5) target bundleno = 1061 (0x425), region = 36  ;;  %s2849_s2 = sshll.u32 (!%p4739_p5), %s249_s0, 10 }
  0xac   : > { %s250_s21 = scalar_lea.sflag (!%p4739_p5), [#allocation4], %s249_s0  ;;  %s4183_s4 = scalar_lea.vmem (!%p4739_p5), [#allocation3], %s2849_s2 }
  0xb2   : > { %3763 = dma.done.wait (%p4740_p4), %s250_s21, 16384  }
  0xb3   : > { %3765 = vsyncadd (%p4740_p4), %s250_s21, 4294950912  ;;  %s258_s3 = sand.u32 1, %s3944_s29   ;;  %s260_s27 = sand.u32 1, %s3800_s19  }
  0xb4   : > { %s2850_s5 = sshll.u32 %s260_s27, 8  ;;  %s259_s10 = scalar_lea.sflag [#allocation7], %s258_s3 }
  0xb5   : > { %s4191_s13 = scalar_lea.vmem [#allocation6], %s2850_s5  ;;  %p4741_p7 = scmp.ne.s32.totalorder %s4719_s7, 0 }
  0xb7   : > { %3767 = dma.done.wait (%p4741_p7), %s259_s10, 4096  }
  0xb8   : > { %3769 = vsyncadd (%p4741_p7), %s259_s10, 4294963200  ;;  %p4742_p6 = scmp.eq.s32.totalorder %s3944_s29, 0 }
  0xba   : > { %3771 = dma.done.wait (%p4742_p6), [#allocation7], 1024   ;;  %p4743_p1 = pmov %p4742_p6 }
  0xbc   : > { %3773 = vsyncadd (%p4743_p1), [#allocation7], 4294966272  ;;  %p4744_p2 = pmov %p4743_p1 }
  0xbd   : > { %p4745_p3 = pmov %p4743_p1 }
  0xbe   : > { %3775 = dma.done.wait (%p4744_p2), [#allocation10], 16  }
  0xbf   : > { %3777 = vsyncadd (%p4745_p3), [#allocation10], 4294967280  ;;  %s4746_s6 = sld [smem:[#allocation18_spill]]  ;;  %s4747_s7 = sld [smem:[#allocation19_spill]] }
  0xc5   : > { %s297_s18 = sand.u32 1, %s4746_s6   ;;  %p2854_p11 = scmp.ne.s32.totalorder %s4747_s7, 0 }
  0xc6   : > { %s2853_s16 = sshll.u32 %s297_s18, 9  ;;  %v3847_v0 = vmov (!%p2854_p11), 0.0  }
  0xc7   : > { %s4208_s11 = scalar_lea.vmem [#allocation11], %s2853_s16  ;;  %308 = sbr.rel (%p2854_p11) target bundleno = 231 (0xe7), region = 56  ;;  %309 = vst [vmem:[#allocation2] sm:$0xff] (!%p2854_p11), %v3847_v0  ;;  %310 = vst [vmem:[#allocation2 + $0x8] sm:$0xff] (!%p2854_p11), %v3847_v0 }
  0xc8   : > { %311 = vst [vmem:[#allocation2 + $0x10] sm:$0xff] (!%p2854_p11), %v3847_v0  ;;  %312 = vst [vmem:[#allocation2 + $0x18] sm:$0xff] (!%p2854_p11), %v3847_v0 }
  0xc9   : > { %313 = vst [vmem:[#allocation2 + $0x20] sm:$0xff] (!%p2854_p11), %v3847_v0  ;;  %314 = vst [vmem:[#allocation2 + $0x28] sm:$0xff] (!%p2854_p11), %v3847_v0 }
  0xca   : > { %315 = vst [vmem:[#allocation2 + $0x30] sm:$0xff] (!%p2854_p11), %v3847_v0  ;;  %316 = vst [vmem:[#allocation2 + $0x38] sm:$0xff] (!%p2854_p11), %v3847_v0 }
  0xcb   : > { %317 = vst [vmem:[#allocation2 + $0x40] sm:$0xff] (!%p2854_p11), %v3847_v0  ;;  %318 = vst [vmem:[#allocation2 + $0x48] sm:$0xff] (!%p2854_p11), %v3847_v0 }
  0xcc   : > { %319 = vst [vmem:[#allocation2 + $0x50] sm:$0xff] (!%p2854_p11), %v3847_v0  ;;  %320 = vst [vmem:[#allocation2 + $0x58] sm:$0xff] (!%p2854_p11), %v3847_v0 }
  0xcd   : > { %321 = vst [vmem:[#allocation2 + $0x60] sm:$0xff] (!%p2854_p11), %v3847_v0  ;;  %322 = vst [vmem:[#allocation2 + $0x68] sm:$0xff] (!%p2854_p11), %v3847_v0 }
  0xce   : > { %323 = vst [vmem:[#allocation2 + $0x70] sm:$0xff] %v3847_v0  ;;  %324 = vst [vmem:[#allocation2 + $0x78] sm:$0xff] %v3847_v0 }
  0xcf   : > { %325 = vst [vmem:[#allocation2 + $0x80] sm:$0xff] %v3847_v0  ;;  %326 = vst [vmem:[#allocation2 + $0x88] sm:$0xff] %v3847_v0 }
  0xd0   : > { %327 = vst [vmem:[#allocation2 + $0x90] sm:$0xff] %v3847_v0  ;;  %328 = vst [vmem:[#allocation2 + $0x98] sm:$0xff] %v3847_v0 }
  0xd1   : > { %329 = vst [vmem:[#allocation2 + $0xa0] sm:$0xff] %v3847_v0  ;;  %330 = vst [vmem:[#allocation2 + $0xa8] sm:$0xff] %v3847_v0 }
  0xd2   : > { %331 = vst [vmem:[#allocation2 + $0xb0] sm:$0xff] %v3847_v0  ;;  %332 = vst [vmem:[#allocation2 + $0xb8] sm:$0xff] %v3847_v0 }
  0xd3   : > { %333 = vst [vmem:[#allocation2 + $0xc0] sm:$0xff] %v3847_v0  ;;  %334 = vst [vmem:[#allocation2 + $0xc8] sm:$0xff] %v3847_v0 }
  0xd4   : > { %335 = vst [vmem:[#allocation2 + $0xd0] sm:$0xff] %v3847_v0  ;;  %336 = vst [vmem:[#allocation2 + $0xd8] sm:$0xff] %v3847_v0 }
  0xd5   : > { %337 = vst [vmem:[#allocation2 + $0xe0] sm:$0xff] %v3847_v0  ;;  %338 = vst [vmem:[#allocation2 + $0xe8] sm:$0xff] %v3847_v0 }
  0xd6   : > { %339 = vst [vmem:[#allocation2 + $0xf0] sm:$0xff] %v3847_v0  ;;  %340 = vst [vmem:[#allocation2 + $0xf8] sm:$0xff] %v3847_v0 }
  0xd7   : > { %341 = vst [vmem:[#allocation2 + $0x100] sm:$0xff] %v3847_v0  ;;  %342 = vst [vmem:[#allocation2 + $0x108] sm:$0xff] %v3847_v0 }
  0xd8   : > { %343 = vst [vmem:[#allocation2 + $0x110] sm:$0xff] %v3847_v0  ;;  %344 = vst [vmem:[#allocation2 + $0x118] sm:$0xff] %v3847_v0 }
  0xd9   : > { %345 = vst [vmem:[#allocation2 + $0x120] sm:$0xff] %v3847_v0  ;;  %346 = vst [vmem:[#allocation2 + $0x128] sm:$0xff] %v3847_v0 }
  0xda   : > { %347 = vst [vmem:[#allocation2 + $0x130] sm:$0xff] %v3847_v0  ;;  %348 = vst [vmem:[#allocation2 + $0x138] sm:$0xff] %v3847_v0 }
  0xdb   : > { %349 = vst [vmem:[#allocation2 + $0x140] sm:$0xff] %v3847_v0  ;;  %350 = vst [vmem:[#allocation2 + $0x148] sm:$0xff] %v3847_v0 }
  0xdc   : > { %351 = vst [vmem:[#allocation2 + $0x150] sm:$0xff] %v3847_v0  ;;  %352 = vst [vmem:[#allocation2 + $0x158] sm:$0xff] %v3847_v0 }
  0xdd   : > { %353 = vst [vmem:[#allocation2 + $0x160] sm:$0xff] %v3847_v0  ;;  %354 = vst [vmem:[#allocation2 + $0x168] sm:$0xff] %v3847_v0 }
  0xde   : > { %355 = vst [vmem:[#allocation2 + $0x170] sm:$0xff] %v3847_v0  ;;  %356 = vst [vmem:[#allocation2 + $0x178] sm:$0xff] %v3847_v0 }
  0xdf   : > { %357 = vst [vmem:[#allocation2 + $0x180] sm:$0xff] %v3847_v0  ;;  %358 = vst [vmem:[#allocation2 + $0x188] sm:$0xff] %v3847_v0 }
  0xe0   : > { %359 = vst [vmem:[#allocation2 + $0x190] sm:$0xff] %v3847_v0  ;;  %360 = vst [vmem:[#allocation2 + $0x198] sm:$0xff] %v3847_v0 }
  0xe1   : > { %361 = vst [vmem:[#allocation2 + $0x1a0] sm:$0xff] %v3847_v0  ;;  %362 = vst [vmem:[#allocation2 + $0x1a8] sm:$0xff] %v3847_v0 }
  0xe2   : > { %363 = vst [vmem:[#allocation2 + $0x1b0] sm:$0xff] %v3847_v0  ;;  %364 = vst [vmem:[#allocation2 + $0x1b8] sm:$0xff] %v3847_v0 }
  0xe3   : > { %365 = vst [vmem:[#allocation2 + $0x1c0] sm:$0xff] %v3847_v0  ;;  %366 = vst [vmem:[#allocation2 + $0x1c8] sm:$0xff] %v3847_v0 }
  0xe4   : > { %367 = vst [vmem:[#allocation2 + $0x1d0] sm:$0xff] %v3847_v0  ;;  %368 = vst [vmem:[#allocation2 + $0x1d8] sm:$0xff] %v3847_v0 }
  0xe5   : > { %369 = vst [vmem:[#allocation2 + $0x1e0] sm:$0xff] %v3847_v0  ;;  %370 = vst [vmem:[#allocation2 + $0x1e8] sm:$0xff] %v3847_v0 }
  0xe6   : > { %371 = vst [vmem:[#allocation2 + $0x1f0] sm:$0xff] %v3847_v0  ;;  %372 = vst [vmem:[#allocation2 + $0x1f8] sm:$0xff] %v3847_v0 }
  0xe7 PF: > { %v3330_v1 = vld [vmem:[%s4191_s13] sm:$0xff]   ;;  %v3848_v2 = vmov 0   ;;  %v3332_v4 = vld [vmem:[%s4191_s13 + $0x8] sm:$0xff]   ;;  %v3334_v6 = vld [vmem:[%s4191_s13 + $0x10] sm:$0xff]   ;;  %s4748_s29 = sld [smem:[#allocation19_spill]] }
  0xe8   : > { %1461 = vmatprep.subr.bf16.mxu0 %v3848_v2  ;;  %1750 = vmatprep.subr.bf16.mxu1 %v3848_v2  ;;  %v3331_v3 = vld [vmem:[%s4191_s13 + $0x80] sm:$0xff]   ;;  %v3333_v5 = vld [vmem:[%s4191_s13 + $0x88] sm:$0xff]   ;;  %v3335_v7 = vld [vmem:[%s4191_s13 + $0x90] sm:$0xff]  }
  0xe9   : > { %1462 = vmatpush1.bf16.msra.mxu0 %v3330_v1  ;;  %1751 = vmatpush1.bf16.msra.mxu1 %v3331_v3  ;;  %v3336_v8 = vld [vmem:[%s4191_s13 + $0x18] sm:$0xff]   ;;  %v3338_v10 = vld [vmem:[%s4191_s13 + $0x20] sm:$0xff]   ;;  %v3340_v12 = vld [vmem:[%s4191_s13 + $0x28] sm:$0xff]  }
  0xea   : > { %1463 = vmatprep.subr.bf16.mxu0 %v3848_v2  ;;  %1752 = vmatprep.subr.bf16.mxu1 %v3848_v2  ;;  %v3337_v9 = vld [vmem:[%s4191_s13 + $0x98] sm:$0xff]   ;;  %v3339_v11 = vld [vmem:[%s4191_s13 + $0xa0] sm:$0xff]   ;;  %v3341_v13 = vld [vmem:[%s4191_s13 + $0xa8] sm:$0xff]  }
  0xeb   : > { %v3342_v14 = vld [vmem:[%s4191_s13 + $0x30] sm:$0xff]   ;;  %v3344_v16 = vld [vmem:[%s4191_s13 + $0x38] sm:$0xff]   ;;  %v3346_v18 = vld [vmem:[%s4191_s13 + $0x40] sm:$0xff]  }
  0xec   : > { %v3343_v15 = vld [vmem:[%s4191_s13 + $0xb0] sm:$0xff]   ;;  %v3345_v17 = vld [vmem:[%s4191_s13 + $0xb8] sm:$0xff]   ;;  %v3347_v19 = vld [vmem:[%s4191_s13 + $0xc0] sm:$0xff]  }
  0xed   : > { %1464 = vmatpush1.bf16.msra.mxu0 %v3332_v4  ;;  %1753 = vmatpush1.bf16.msra.mxu1 %v3333_v5  ;;  %v3364_v20 = vld [vmem:[%s4183_s4 + $0x4] ss:$16 sps:$4 sm:$0xff]   ;;  %v3348_v21 = vld [vmem:[%s4191_s13 + $0x48] sm:$0xff]   ;;  %v3352_v26 = vld [vmem:[%s4191_s13 + $0x58] sm:$0xff]   ;;  %p3015_p10 = scmp.ne.s32.totalorder %s4748_s29, 1 }
  0xee   : > { %1465 = vmatprep.subr.bf16.mxu0 %v3848_v2  ;;  %1754 = vmatprep.subr.bf16.mxu1 %v3848_v2  ;;  %v3367_v22 = vld [vmem:[%s4183_s4 + $0xc] ss:$16 sps:$4 sm:$0xff]   ;;  %v3350_v24 = vld [vmem:[%s4191_s13 + $0x50] sm:$0xff]   ;;  %v3354_v28 = vld [vmem:[%s4191_s13 + $0x60] sm:$0xff]  }
  0xef   : > { %v3349_v23 = vld [vmem:[%s4191_s13 + $0xc8] sm:$0xff]   ;;  %1493 = vmatprep.mubr.bf16.mxu0 %v3364_v20  ;;  %1782 = vmatprep.mubr.bf16.mxu1 %v3367_v22  ;;  %v3351_v25 = vld [vmem:[%s4191_s13 + $0xd0] sm:$0xff]   ;;  %v3353_v27 = vld [vmem:[%s4191_s13 + $0xd8] sm:$0xff]  }
  0xf0   : > { %v3355_v29 = vld [vmem:[%s4191_s13 + $0xe0] sm:$0xff]   ;;  %v3356_v30 = vld [vmem:[%s4191_s13 + $0x68] sm:$0xff]   ;;  %v3358_v32 = vld [vmem:[%s4191_s13 + $0x70] sm:$0xff]  }
  0xf1   : > { %1466 = vmatpush1.bf16.msra.mxu0 %v3334_v6  ;;  %1755 = vmatpush1.bf16.msra.mxu1 %v3335_v7  ;;  %v3357_v31 = vld [vmem:[%s4191_s13 + $0xe8] sm:$0xff]   ;;  %v3359_v33 = vld [vmem:[%s4191_s13 + $0xf0] sm:$0xff]   ;;  %v3360_v34 = vld [vmem:[%s4191_s13 + $0x78] sm:$0xff]  }
  0xf2   : > { %1467 = vmatprep.subr.bf16.mxu0 %v3848_v2  ;;  %1756 = vmatprep.subr.bf16.mxu1 %v3848_v2  ;;  %v3361_v35 = vld [vmem:[%s4191_s13 + $0xf8] sm:$0xff]   ;;  %v3362_v36 = vld [vmem:[%s4183_s4] ss:$16 sps:$4 sm:$0xff]   ;;  %v3368_v38 = vld [vmem:[%s4183_s4 + $0x24] ss:$16 sps:$4 sm:$0xff]  }
  0xf3   : > { %v3365_v37 = vld [vmem:[%s4183_s4 + $0x8] ss:$16 sps:$4 sm:$0xff]   ;;  %v3370_v39 = vld [vmem:[%s4183_s4 + $0x2c] ss:$16 sps:$4 sm:$0xff]   ;;  %v3372_v40 = vld [vmem:[%s4183_s4 + $0x20] ss:$16 sps:$4 sm:$0xff]  }
  0xf4   : > { %v3373_v41 = vld [vmem:[%s4183_s4 + $0x28] ss:$16 sps:$4 sm:$0xff]   ;;  %v3374_v42 = vld [vmem:[%s4183_s4 + $0x44] ss:$16 sps:$4 sm:$0xff]   ;;  %v3376_v43 = vld [vmem:[%s4183_s4 + $0x4c] ss:$16 sps:$4 sm:$0xff]  }
  0xf5   : > { %1468 = vmatpush1.bf16.msra.mxu0 %v3336_v8  ;;  %1757 = vmatpush1.bf16.msra.mxu1 %v3337_v9  ;;  %v3378_v44 = vld [vmem:[%s4183_s4 + $0x40] ss:$16 sps:$4 sm:$0xff]   ;;  %v3379_v45 = vld [vmem:[%s4183_s4 + $0x48] ss:$16 sps:$4 sm:$0xff]   ;;  %v3380_v46 = vld [vmem:[%s4183_s4 + $0x64] ss:$16 sps:$4 sm:$0xff]  }
  0xf6   : > { %1469 = vmatprep.subr.bf16.mxu0 %v3848_v2  ;;  %1758 = vmatprep.subr.bf16.mxu1 %v3848_v2  ;;  %v3382_v47 = vld [vmem:[%s4183_s4 + $0x6c] ss:$16 sps:$4 sm:$0xff]   ;;  %v3384_v48 = vld [vmem:[%s4183_s4 + $0x60] ss:$16 sps:$4 sm:$0xff]   ;;  %v3385_v49 = vld [vmem:[%s4183_s4 + $0x68] ss:$16 sps:$4 sm:$0xff]  }
  0xf7   : > { %v3386_v50 = vld [vmem:[%s4183_s4 + $0x84] ss:$16 sps:$4 sm:$0xff]   ;;  %v3388_v51 = vld [vmem:[%s4183_s4 + $0x8c] ss:$16 sps:$4 sm:$0xff]   ;;  %v3390_v52 = vld [vmem:[%s4183_s4 + $0x80] ss:$16 sps:$4 sm:$0xff]  }
  0xf8   : > { %v3391_v53 = vld [vmem:[%s4183_s4 + $0x88] ss:$16 sps:$4 sm:$0xff]   ;;  %v3392_v54 = vld [vmem:[%s4183_s4 + $0xa4] ss:$16 sps:$4 sm:$0xff]   ;;  %v3394_v55 = vld [vmem:[%s4183_s4 + $0xac] ss:$16 sps:$4 sm:$0xff]  }
  0xf9   : > { %1470 = vmatpush1.bf16.msra.mxu0 %v3338_v10  ;;  %1759 = vmatpush1.bf16.msra.mxu1 %v3339_v11  ;;  %v3396_v56 = vld [vmem:[%s4183_s4 + $0xa0] ss:$16 sps:$4 sm:$0xff]   ;;  %v3397_v57 = vld [vmem:[%s4183_s4 + $0xa8] ss:$16 sps:$4 sm:$0xff]   ;;  %v3398_v58 = vld [vmem:[%s4183_s4 + $0xc4] ss:$16 sps:$4 sm:$0xff]  }
  0xfa   : > { %1471 = vmatprep.subr.bf16.mxu0 %v3848_v2  ;;  %1760 = vmatprep.subr.bf16.mxu1 %v3848_v2  ;;  %v3400_v59 = vld [vmem:[%s4183_s4 + $0xcc] ss:$16 sps:$4 sm:$0xff]   ;;  %v3402_v60 = vld [vmem:[%s4183_s4 + $0xc0] ss:$16 sps:$4 sm:$0xff]   ;;  %v3403_v61 = vld [vmem:[%s4183_s4 + $0xc8] ss:$16 sps:$4 sm:$0xff]  }
  0xfb   : > { %v3404_v62 = vld [vmem:[%s4183_s4 + $0xe4] ss:$16 sps:$4 sm:$0xff]   ;;  %v3406_v63 = vld [vmem:[%s4183_s4 + $0xec] ss:$16 sps:$4 sm:$0xff]   ;;  %v3408_v0 = vld [vmem:[%s4183_s4 + $0xe0] ss:$16 sps:$4 sm:$0xff]  }
  0xfc   : > { %v3409_v1 = vld [vmem:[%s4183_s4 + $0xe8] ss:$16 sps:$4 sm:$0xff]   ;;  %v3412_v3 = vld [vmem:[%s4183_s4 + $0x10c] ss:$16 sps:$4 sm:$0xff]   ;;  %v3414_v4 = vld [vmem:[%s4183_s4 + $0x100] ss:$16 sps:$4 sm:$0xff]  }
  0xfd   : > { %1472 = vmatpush1.bf16.msra.mxu0 %v3340_v12  ;;  %1761 = vmatpush1.bf16.msra.mxu1 %v3341_v13  ;;  %v3415_v5 = vld [vmem:[%s4183_s4 + $0x108] ss:$16 sps:$4 sm:$0xff]   ;;  %v3416_v6 = vld [vmem:[%s4183_s4 + $0x124] ss:$16 sps:$4 sm:$0xff]   ;;  %v3418_v7 = vld [vmem:[%s4183_s4 + $0x12c] ss:$16 sps:$4 sm:$0xff]  }
  0xfe   : > { %1473 = vmatprep.subr.bf16.mxu0 %v3848_v2  ;;  %1762 = vmatprep.subr.bf16.mxu1 %v3848_v2  ;;  %v3420_v8 = vld [vmem:[%s4183_s4 + $0x120] ss:$16 sps:$4 sm:$0xff]   ;;  %v3421_v9 = vld [vmem:[%s4183_s4 + $0x128] ss:$16 sps:$4 sm:$0xff]   ;;  %v3422_v10 = vld [vmem:[%s4183_s4 + $0x144] ss:$16 sps:$4 sm:$0xff]  }
  0xff   : > { %v3424_v11 = vld [vmem:[%s4183_s4 + $0x14c] ss:$16 sps:$4 sm:$0xff]   ;;  %v3426_v12 = vld [vmem:[%s4183_s4 + $0x140] ss:$16 sps:$4 sm:$0xff]   ;;  %v3427_v13 = vld [vmem:[%s4183_s4 + $0x148] ss:$16 sps:$4 sm:$0xff]  }
 0x100   : > { %v3438_v20 = vld [vmem:[%s4183_s4 + $0x180] ss:$16 sps:$4 sm:$0xff]   ;;  %v3440_v22 = vld [vmem:[%s4183_s4 + $0x1a4] ss:$16 sps:$4 sm:$0xff]  }
 0x101   : > { %1474 = vmatpush1.bf16.msra.mxu0 %v3342_v14  ;;  %1763 = vmatpush1.bf16.msra.mxu1 %v3343_v15  ;;  %v3428_v14 = vld [vmem:[%s4183_s4 + $0x164] ss:$16 sps:$4 sm:$0xff]   ;;  %v3430_v15 = vld [vmem:[%s4183_s4 + $0x16c] ss:$16 sps:$4 sm:$0xff]  }
 0x102   : > { %1475 = vmatprep.subr.bf16.mxu0 %v3848_v2  ;;  %1764 = vmatprep.subr.bf16.mxu1 %v3848_v2 }
 0x105   : > { %1476 = vmatpush1.bf16.msra.mxu0 %v3344_v16  ;;  %1765 = vmatpush1.bf16.msra.mxu1 %v3345_v17  ;;  %v3432_v16 = vld [vmem:[%s4183_s4 + $0x160] ss:$16 sps:$4 sm:$0xff]   ;;  %v3433_v17 = vld [vmem:[%s4183_s4 + $0x168] ss:$16 sps:$4 sm:$0xff]  }
 0x106   : > { %1477 = vmatprep.subr.bf16.mxu0 %v3848_v2  ;;  %1766 = vmatprep.subr.bf16.mxu1 %v3848_v2 }
 0x109   : > { %1478 = vmatpush1.bf16.msra.mxu0 %v3346_v18  ;;  %1767 = vmatpush1.bf16.msra.mxu1 %v3347_v19  ;;  %v3434_v18 = vld [vmem:[%s4183_s4 + $0x184] ss:$16 sps:$4 sm:$0xff]   ;;  %v3436_v19 = vld [vmem:[%s4183_s4 + $0x18c] ss:$16 sps:$4 sm:$0xff]  }
 0x10a   : > { %1479 = vmatprep.subr.bf16.mxu0 %v3848_v2  ;;  %1768 = vmatprep.subr.bf16.mxu1 %v3848_v2 }
 0x10d   : > { %1480 = vmatpush1.bf16.msra.mxu0 %v3348_v21  ;;  %1769 = vmatpush1.bf16.msra.mxu1 %v3349_v23  ;;  %v3439_v21 = vld [vmem:[%s4183_s4 + $0x188] ss:$16 sps:$4 sm:$0xff]   ;;  %v3442_v23 = vld [vmem:[%s4183_s4 + $0x1ac] ss:$16 sps:$4 sm:$0xff]  }
 0x10e   : > { %1481 = vmatprep.subr.bf16.mxu0 %v3848_v2  ;;  %1770 = vmatprep.subr.bf16.mxu1 %v3848_v2 }
 0x111   : > { %1482 = vmatpush1.bf16.msra.mxu0 %v3350_v24  ;;  %1771 = vmatpush1.bf16.msra.mxu1 %v3351_v25  ;;  %v3444_v24 = vld [vmem:[%s4183_s4 + $0x1a0] ss:$16 sps:$4 sm:$0xff]   ;;  %v3445_v25 = vld [vmem:[%s4183_s4 + $0x1a8] ss:$16 sps:$4 sm:$0xff]  }
 0x112   : > { %1483 = vmatprep.subr.bf16.mxu0 %v3848_v2  ;;  %1772 = vmatprep.subr.bf16.mxu1 %v3848_v2 }
 0x115   : > { %1484 = vmatpush1.bf16.msra.mxu0 %v3352_v26  ;;  %1773 = vmatpush1.bf16.msra.mxu1 %v3353_v27  ;;  %v3446_v26 = vld [vmem:[%s4183_s4 + $0x1c4] ss:$16 sps:$4 sm:$0xff]   ;;  %v3448_v27 = vld [vmem:[%s4183_s4 + $0x1cc] ss:$16 sps:$4 sm:$0xff]  }
 0x116   : > { %1485 = vmatprep.subr.bf16.mxu0 %v3848_v2  ;;  %1774 = vmatprep.subr.bf16.mxu1 %v3848_v2 }
 0x119   : > { %1486 = vmatpush1.bf16.msra.mxu0 %v3354_v28  ;;  %1775 = vmatpush1.bf16.msra.mxu1 %v3355_v29  ;;  %v3450_v28 = vld [vmem:[%s4183_s4 + $0x1c0] ss:$16 sps:$4 sm:$0xff]   ;;  %v3451_v29 = vld [vmem:[%s4183_s4 + $0x1c8] ss:$16 sps:$4 sm:$0xff]  }
 0x11a   : > { %1487 = vmatprep.subr.bf16.mxu0 %v3848_v2  ;;  %1776 = vmatprep.subr.bf16.mxu1 %v3848_v2 }
 0x11d   : > { %1488 = vmatpush1.bf16.msra.mxu0 %v3356_v30  ;;  %1777 = vmatpush1.bf16.msra.mxu1 %v3357_v31  ;;  %v3452_v30 = vld [vmem:[%s4183_s4 + $0x1e4] ss:$16 sps:$4 sm:$0xff]   ;;  %v3454_v31 = vld [vmem:[%s4183_s4 + $0x1ec] ss:$16 sps:$4 sm:$0xff]  }
 0x11e   : > { %1489 = vmatprep.subr.bf16.mxu0 %v3848_v2  ;;  %1778 = vmatprep.subr.bf16.mxu1 %v3848_v2 }
 0x121   : > { %1490 = vmatpush1.bf16.msra.mxu0 %v3358_v32  ;;  %1779 = vmatpush1.bf16.msra.mxu1 %v3359_v33  ;;  %v3456_v32 = vld [vmem:[%s4183_s4 + $0x1e0] ss:$16 sps:$4 sm:$0xff]   ;;  %v3457_v33 = vld [vmem:[%s4183_s4 + $0x1e8] ss:$16 sps:$4 sm:$0xff]  }
 0x122   : > { %1491 = vmatprep.subr.bf16.mxu0 %v3848_v2  ;;  %1780 = vmatprep.subr.bf16.mxu1 %v3848_v2  ;;  %v3410_v2 = vld [vmem:[%s4183_s4 + $0x104] ss:$16 sps:$4 sm:$0xff]  }
 0x125   : > { %1492 = vmatpush1.bf16.msra.mxu0 %v3360_v34  ;;  %1781 = vmatpush1.bf16.msra.mxu1 %v3361_v35  ;;  %v3458_v34 = vld [vmem:[%s4183_s4 + $0x204] ss:$16 sps:$4 sm:$0xff]   ;;  %v3460_v35 = vld [vmem:[%s4183_s4 + $0x20c] ss:$16 sps:$4 sm:$0xff]  }
 0x128   : > { %1494 = vmatmul.mubr.bf16.vlgmr.msra.gmra.mrb[0].mxu0 %v3362_v36  ;;  %1783 = vmatmul.mubr.bf16.vlgmr.msra.gmra.mrb[0].mxu1 %v3365_v37  ;;  %v3462_v36 = vld [vmem:[%s4183_s4 + $0x200] ss:$16 sps:$4 sm:$0xff]   ;;  %v3463_v37 = vld [vmem:[%s4183_s4 + $0x208] ss:$16 sps:$4 sm:$0xff]  }
 0x129   : > { %1501 = vmatprep.mubr.bf16.mxu0 %v3368_v38  ;;  %1790 = vmatprep.mubr.bf16.mxu1 %v3370_v39  ;;  %v3464_v38 = vld [vmem:[%s4183_s4 + $0x224] ss:$16 sps:$4 sm:$0xff]   ;;  %v3466_v39 = vld [vmem:[%s4183_s4 + $0x22c] ss:$16 sps:$4 sm:$0xff]  }
 0x130   : > { %1502 = vmatmul.mubr.bf16.gmra.mrb[4].mxu0 %v3372_v40  ;;  %1791 = vmatmul.mubr.bf16.gmra.mrb[4].mxu1 %v3373_v41  ;;  %v3468_v40 = vld [vmem:[%s4183_s4 + $0x220] ss:$16 sps:$4 sm:$0xff]   ;;  %v3469_v41 = vld [vmem:[%s4183_s4 + $0x228] ss:$16 sps:$4 sm:$0xff]  }
 0x131   : > { %1509 = vmatprep.mubr.bf16.mxu0 %v3374_v42  ;;  %1798 = vmatprep.mubr.bf16.mxu1 %v3376_v43  ;;  %v3470_v42 = vld [vmem:[%s4183_s4 + $0x244] ss:$16 sps:$4 sm:$0xff]   ;;  %v3472_v43 = vld [vmem:[%s4183_s4 + $0x24c] ss:$16 sps:$4 sm:$0xff]  }
 0x138   : > { %1510 = vmatmul.mubr.bf16.gmra.mrb[8].mxu0 %v3378_v44  ;;  %1799 = vmatmul.mubr.bf16.gmra.mrb[8].mxu1 %v3379_v45  ;;  %v3474_v44 = vld [vmem:[%s4183_s4 + $0x240] ss:$16 sps:$4 sm:$0xff]   ;;  %v3475_v45 = vld [vmem:[%s4183_s4 + $0x248] ss:$16 sps:$4 sm:$0xff]  }
 0x139   : > { %1517 = vmatprep.mubr.bf16.mxu0 %v3380_v46  ;;  %1806 = vmatprep.mubr.bf16.mxu1 %v3382_v47  ;;  %v3476_v46 = vld [vmem:[%s4183_s4 + $0x264] ss:$16 sps:$4 sm:$0xff]   ;;  %v3478_v47 = vld [vmem:[%s4183_s4 + $0x26c] ss:$16 sps:$4 sm:$0xff]  }
 0x140   : > { %1518 = vmatmul.mubr.bf16.gmra.mrb[12].mxu0 %v3384_v48  ;;  %1807 = vmatmul.mubr.bf16.gmra.mrb[12].mxu1 %v3385_v49  ;;  %v3480_v48 = vld [vmem:[%s4183_s4 + $0x260] ss:$16 sps:$4 sm:$0xff]   ;;  %v3481_v49 = vld [vmem:[%s4183_s4 + $0x268] ss:$16 sps:$4 sm:$0xff]  }
 0x141   : > { %1525 = vmatprep.mubr.bf16.mxu0 %v3386_v50  ;;  %1814 = vmatprep.mubr.bf16.mxu1 %v3388_v51  ;;  %v3482_v50 = vld [vmem:[%s4183_s4 + $0x284] ss:$16 sps:$4 sm:$0xff]   ;;  %v3484_v51 = vld [vmem:[%s4183_s4 + $0x28c] ss:$16 sps:$4 sm:$0xff]  }
 0x148   : > { %1526 = vmatmul.mubr.bf16.gmra.mrb[16].mxu0 %v3390_v52  ;;  %1815 = vmatmul.mubr.bf16.gmra.mrb[16].mxu1 %v3391_v53  ;;  %v3486_v52 = vld [vmem:[%s4183_s4 + $0x280] ss:$16 sps:$4 sm:$0xff]   ;;  %v3487_v53 = vld [vmem:[%s4183_s4 + $0x288] ss:$16 sps:$4 sm:$0xff]  }
 0x149   : > { %1533 = vmatprep.mubr.bf16.mxu0 %v3392_v54  ;;  %1822 = vmatprep.mubr.bf16.mxu1 %v3394_v55  ;;  %v3488_v54 = vld [vmem:[%s4183_s4 + $0x2a4] ss:$16 sps:$4 sm:$0xff]   ;;  %v3490_v55 = vld [vmem:[%s4183_s4 + $0x2ac] ss:$16 sps:$4 sm:$0xff]  }
 0x150   : > { %1534 = vmatmul.mubr.bf16.gmra.mrb[20].mxu0 %v3396_v56  ;;  %1823 = vmatmul.mubr.bf16.gmra.mrb[20].mxu1 %v3397_v57  ;;  %v3492_v56 = vld [vmem:[%s4183_s4 + $0x2a0] ss:$16 sps:$4 sm:$0xff]   ;;  %v3493_v57 = vld [vmem:[%s4183_s4 + $0x2a8] ss:$16 sps:$4 sm:$0xff]  }
 0x151   : > { %1541 = vmatprep.mubr.bf16.mxu0 %v3398_v58  ;;  %1830 = vmatprep.mubr.bf16.mxu1 %v3400_v59  ;;  %v3494_v58 = vld [vmem:[%s4183_s4 + $0x2c4] ss:$16 sps:$4 sm:$0xff]   ;;  %v3496_v59 = vld [vmem:[%s4183_s4 + $0x2cc] ss:$16 sps:$4 sm:$0xff]  }
 0x158   : > { %1542 = vmatmul.mubr.bf16.gmra.mrb[24].mxu0 %v3402_v60  ;;  %1831 = vmatmul.mubr.bf16.gmra.mrb[24].mxu1 %v3403_v61  ;;  %v3498_v60 = vld [vmem:[%s4183_s4 + $0x2c0] ss:$16 sps:$4 sm:$0xff]   ;;  %v3499_v61 = vld [vmem:[%s4183_s4 + $0x2c8] ss:$16 sps:$4 sm:$0xff]  }
 0x159   : > { %1549 = vmatprep.mubr.bf16.mxu0 %v3404_v62  ;;  %1838 = vmatprep.mubr.bf16.mxu1 %v3406_v63  ;;  %v3500_v62 = vld [vmem:[%s4183_s4 + $0x2e4] ss:$16 sps:$4 sm:$0xff]   ;;  %v3502_v63 = vld [vmem:[%s4183_s4 + $0x2ec] ss:$16 sps:$4 sm:$0xff]  }
 0x160   : > { %1550 = vmatmul.mubr.bf16.gmra.mrb[28].mxu0 %v3408_v0  ;;  %1839 = vmatmul.mubr.bf16.gmra.mrb[28].mxu1 %v3409_v1  ;;  %v3504_v0 = vld [vmem:[%s4183_s4 + $0x2e0] ss:$16 sps:$4 sm:$0xff]   ;;  %v3505_v1 = vld [vmem:[%s4183_s4 + $0x2e8] ss:$16 sps:$4 sm:$0xff]  }
 0x161   : > { %1557 = vmatprep.mubr.bf16.mxu0 %v3410_v2  ;;  %1846 = vmatprep.mubr.bf16.mxu1 %v3412_v3  ;;  %v3506_v2 = vld [vmem:[%s4183_s4 + $0x304] ss:$16 sps:$4 sm:$0xff]   ;;  %v3508_v3 = vld [vmem:[%s4183_s4 + $0x30c] ss:$16 sps:$4 sm:$0xff]  }
 0x168   : > { %1558 = vmatmul.mubr.bf16.gmra.mrb[32].mxu0 %v3414_v4  ;;  %1847 = vmatmul.mubr.bf16.gmra.mrb[32].mxu1 %v3415_v5  ;;  %v3510_v4 = vld [vmem:[%s4183_s4 + $0x300] ss:$16 sps:$4 sm:$0xff]   ;;  %v3511_v5 = vld [vmem:[%s4183_s4 + $0x308] ss:$16 sps:$4 sm:$0xff]  }
 0x169   : > { %1565 = vmatprep.mubr.bf16.mxu0 %v3416_v6  ;;  %1854 = vmatprep.mubr.bf16.mxu1 %v3418_v7  ;;  %v3512_v6 = vld [vmem:[%s4183_s4 + $0x324] ss:$16 sps:$4 sm:$0xff]   ;;  %v3514_v7 = vld [vmem:[%s4183_s4 + $0x32c] ss:$16 sps:$4 sm:$0xff]  }
 0x170   : > { %1566 = vmatmul.mubr.bf16.gmra.mrb[36].mxu0 %v3420_v8  ;;  %1855 = vmatmul.mubr.bf16.gmra.mrb[36].mxu1 %v3421_v9  ;;  %v3516_v8 = vld [vmem:[%s4183_s4 + $0x320] ss:$16 sps:$4 sm:$0xff]   ;;  %v3517_v9 = vld [vmem:[%s4183_s4 + $0x328] ss:$16 sps:$4 sm:$0xff]  }
 0x171   : > { %1573 = vmatprep.mubr.bf16.mxu0 %v3422_v10  ;;  %1862 = vmatprep.mubr.bf16.mxu1 %v3424_v11  ;;  %v3518_v10 = vld [vmem:[%s4183_s4 + $0x344] ss:$16 sps:$4 sm:$0xff]   ;;  %v3520_v11 = vld [vmem:[%s4183_s4 + $0x34c] ss:$16 sps:$4 sm:$0xff]  }
 0x178   : > { %1574 = vmatmul.mubr.bf16.gmra.mrb[40].mxu0 %v3426_v12  ;;  %1863 = vmatmul.mubr.bf16.gmra.mrb[40].mxu1 %v3427_v13  ;;  %v3522_v12 = vld [vmem:[%s4183_s4 + $0x340] ss:$16 sps:$4 sm:$0xff]   ;;  %v3523_v13 = vld [vmem:[%s4183_s4 + $0x348] ss:$16 sps:$4 sm:$0xff]  }
 0x179   : > { %1581 = vmatprep.mubr.bf16.mxu0 %v3428_v14  ;;  %1870 = vmatprep.mubr.bf16.mxu1 %v3430_v15  ;;  %v3524_v14 = vld [vmem:[%s4183_s4 + $0x364] ss:$16 sps:$4 sm:$0xff]   ;;  %v3526_v15 = vld [vmem:[%s4183_s4 + $0x36c] ss:$16 sps:$4 sm:$0xff]  }
 0x180   : > { %1582 = vmatmul.mubr.bf16.gmra.mrb[44].mxu0 %v3432_v16  ;;  %1871 = vmatmul.mubr.bf16.gmra.mrb[44].mxu1 %v3433_v17  ;;  %v373_v17 = vld [vmem:[#allocation2] sm:$0xff] }
 0x181   : > { %1589 = vmatprep.mubr.bf16.mxu0 %v3434_v18  ;;  %1878 = vmatprep.mubr.bf16.mxu1 %v3436_v19 }
 0x188   : > { %1590 = vmatmul.mubr.bf16.gmra.mrb[48].mxu0 %v3438_v20  ;;  %1879 = vmatmul.mubr.bf16.gmra.mrb[48].mxu1 %v3439_v21  ;;  %v3528_v20 = vld [vmem:[%s4183_s4 + $0x360] ss:$16 sps:$4 sm:$0xff]  }
 0x189   : > { %1597 = vmatprep.mubr.bf16.mxu0 %v3440_v22  ;;  %1886 = vmatprep.mubr.bf16.mxu1 %v3442_v23 }
 0x190   : > { %1598 = vmatmul.mubr.bf16.gmra.mrb[52].mxu0 %v3444_v24  ;;  %1887 = vmatmul.mubr.bf16.gmra.mrb[52].mxu1 %v3445_v25  ;;  %v3529_v24 = vld [vmem:[%s4183_s4 + $0x368] ss:$16 sps:$4 sm:$0xff]   ;;  %v3530_v25 = vld [vmem:[%s4183_s4 + $0x384] ss:$16 sps:$4 sm:$0xff]  }
 0x191   : > { %1605 = vmatprep.mubr.bf16.mxu0 %v3446_v26  ;;  %1894 = vmatprep.mubr.bf16.mxu1 %v3448_v27  ;;  %v374_v26 = vld [vmem:[#allocation2 + $0x8] sm:$0xff] }
 0x198   : > { %1606 = vmatmul.mubr.bf16.gmra.mrb[56].mxu0 %v3450_v28  ;;  %1895 = vmatmul.mubr.bf16.gmra.mrb[56].mxu1 %v3451_v29  ;;  %v3532_v29 = vld [vmem:[%s4183_s4 + $0x38c] ss:$16 sps:$4 sm:$0xff]  }
 0x199   : > { %1613 = vmatprep.mubr.bf16.mxu0 %v3452_v30  ;;  %1902 = vmatprep.mubr.bf16.mxu1 %v3454_v31 }
 0x1a0   : > { %1614 = vmatmul.mubr.bf16.gmra.mrb[60].mxu0 %v3456_v32  ;;  %1903 = vmatmul.mubr.bf16.gmra.mrb[60].mxu1 %v3457_v33 }
 0x1a1   : > { %1621 = vmatprep.mubr.bf16.mxu0 %v3458_v34  ;;  %1910 = vmatprep.mubr.bf16.mxu1 %v3460_v35  ;;  %v375_v35 = vld [vmem:[#allocation2 + $0x10] sm:$0xff] }
 0x1a8   : > { %1622 = vmatmul.mubr.bf16.gmra.mrb[64].mxu0 %v3462_v36  ;;  %1911 = vmatmul.mubr.bf16.gmra.mrb[64].mxu1 %v3463_v37 }
 0x1a9   : > { %1629 = vmatprep.mubr.bf16.mxu0 %v3464_v38  ;;  %1918 = vmatprep.mubr.bf16.mxu1 %v3466_v39  ;;  %v3534_v38 = vld [vmem:[%s4183_s4 + $0x380] ss:$16 sps:$4 sm:$0xff]  }
 0x1b0   : > { %1630 = vmatmul.mubr.bf16.gmra.mrb[68].mxu0 %v3468_v40  ;;  %1919 = vmatmul.mubr.bf16.gmra.mrb[68].mxu1 %v3469_v41 }
 0x1b1   : > { %1637 = vmatprep.mubr.bf16.mxu0 %v3470_v42  ;;  %1926 = vmatprep.mubr.bf16.mxu1 %v3472_v43  ;;  %v3535_v42 = vld [vmem:[%s4183_s4 + $0x388] ss:$16 sps:$4 sm:$0xff]   ;;  %v3536_v43 = vld [vmem:[%s4183_s4 + $0x3a4] ss:$16 sps:$4 sm:$0xff]  }
 0x1b8   : > { %1638 = vmatmul.mubr.bf16.gmra.mrb[72].mxu0 %v3474_v44  ;;  %1927 = vmatmul.mubr.bf16.gmra.mrb[72].mxu1 %v3475_v45  ;;  %v376_v44 = vld [vmem:[#allocation2 + $0x18] sm:$0xff] }
 0x1b9   : > { %1645 = vmatprep.mubr.bf16.mxu0 %v3476_v46  ;;  %1934 = vmatprep.mubr.bf16.mxu1 %v3478_v47  ;;  %v3538_v47 = vld [vmem:[%s4183_s4 + $0x3ac] ss:$16 sps:$4 sm:$0xff]  }
 0x1c0   : > { %1646 = vmatmul.mubr.bf16.gmra.mrb[76].mxu0 %v3480_v48  ;;  %1935 = vmatmul.mubr.bf16.gmra.mrb[76].mxu1 %v3481_v49 }
 0x1c1   : > { %1653 = vmatprep.mubr.bf16.mxu0 %v3482_v50  ;;  %1942 = vmatprep.mubr.bf16.mxu1 %v3484_v51 }
 0x1c8   : > { %1654 = vmatmul.mubr.bf16.gmra.mrb[80].mxu0 %v3486_v52  ;;  %1943 = vmatmul.mubr.bf16.gmra.mrb[80].mxu1 %v3487_v53  ;;  %v377_v53 = vld [vmem:[#allocation2 + $0x20] sm:$0xff] }
 0x1c9   : > { %1661 = vmatprep.mubr.bf16.mxu0 %v3488_v54  ;;  %1950 = vmatprep.mubr.bf16.mxu1 %v3490_v55 }
 0x1d0   : > { %1662 = vmatmul.mubr.bf16.gmra.mrb[84].mxu0 %v3492_v56  ;;  %1951 = vmatmul.mubr.bf16.gmra.mrb[84].mxu1 %v3493_v57  ;;  %v3540_v56 = vld [vmem:[%s4183_s4 + $0x3a0] ss:$16 sps:$4 sm:$0xff]  }
 0x1d1   : > { %1669 = vmatprep.mubr.bf16.mxu0 %v3494_v58  ;;  %1958 = vmatprep.mubr.bf16.mxu1 %v3496_v59 }
 0x1d8   : > { %1670 = vmatmul.mubr.bf16.gmra.mrb[88].mxu0 %v3498_v60  ;;  %1959 = vmatmul.mubr.bf16.gmra.mrb[88].mxu1 %v3499_v61  ;;  %v3541_v60 = vld [vmem:[%s4183_s4 + $0x3a8] ss:$16 sps:$4 sm:$0xff]   ;;  %v3542_v61 = vld [vmem:[%s4183_s4 + $0x3c4] ss:$16 sps:$4 sm:$0xff]  }
 0x1d9   : > { %1677 = vmatprep.mubr.bf16.mxu0 %v3500_v62  ;;  %1966 = vmatprep.mubr.bf16.mxu1 %v3502_v63  ;;  %v378_v62 = vld [vmem:[#allocation2 + $0x28] sm:$0xff] }
 0x1e0   : > { %1678 = vmatmul.mubr.bf16.gmra.mrb[92].mxu0 %v3504_v0  ;;  %1967 = vmatmul.mubr.bf16.gmra.mrb[92].mxu1 %v3505_v1  ;;  %v3544_v1 = vld [vmem:[%s4183_s4 + $0x3cc] ss:$16 sps:$4 sm:$0xff]  }
 0x1e1   : > { %1685 = vmatprep.mubr.bf16.mxu0 %v3506_v2  ;;  %1974 = vmatprep.mubr.bf16.mxu1 %v3508_v3 }
 0x1e8   : > { %1686 = vmatmul.mubr.bf16.gmra.mrb[96].mxu0 %v3510_v4  ;;  %1975 = vmatmul.mubr.bf16.gmra.mrb[96].mxu1 %v3511_v5 }
 0x1e9   : > { %1693 = vmatprep.mubr.bf16.mxu0 %v3512_v6  ;;  %1982 = vmatprep.mubr.bf16.mxu1 %v3514_v7  ;;  %v379_v7 = vld [vmem:[#allocation2 + $0x30] sm:$0xff] }
 0x1f0   : > { %1694 = vmatmul.mubr.bf16.gmra.mrb[100].mxu0 %v3516_v8  ;;  %1983 = vmatmul.mubr.bf16.gmra.mrb[100].mxu1 %v3517_v9 }
 0x1f1   : > { %1701 = vmatprep.mubr.bf16.mxu0 %v3518_v10  ;;  %1990 = vmatprep.mubr.bf16.mxu1 %v3520_v11  ;;  %v3546_v10 = vld [vmem:[%s4183_s4 + $0x3c0] ss:$16 sps:$4 sm:$0xff]  }
 0x1f8   : > { %1702 = vmatmul.mubr.bf16.gmra.mrb[104].mxu0 %v3522_v12  ;;  %1991 = vmatmul.mubr.bf16.gmra.mrb[104].mxu1 %v3523_v13 }
 0x1f9   : > { %1709 = vmatprep.mubr.bf16.mxu0 %v3524_v14  ;;  %1998 = vmatprep.mubr.bf16.mxu1 %v3526_v15  ;;  %v3547_v14 = vld [vmem:[%s4183_s4 + $0x3c8] ss:$16 sps:$4 sm:$0xff]   ;;  %v3548_v15 = vld [vmem:[%s4183_s4 + $0x3e4] ss:$16 sps:$4 sm:$0xff]  }
 0x1fb   : > { %v1495_v16 = vpop.f32.mrb[0].mxu0  ;;  %v1784_v18 = vpop.f32.mrb[0].mxu1 }
 0x1fc   : > { %v1497_v19 = vpop.f32.mrb[1].mxu0  ;;  %v1785_v21 = vadd.f32 %v1784_v18, %v1495_v16  ;;  %v1786_v22 = vpop.f32.mrb[1].mxu1  ;;  %v380_v16 = vld [vmem:[#allocation2 + $0x38] sm:$0xff] }
 0x1fd   : > { %v1498_v23 = vpop.f32.mrb[2].mxu0  ;;  %v1787_v27 = vpop.f32.mrb[2].mxu1  ;;  %v3550_v19 = vld [vmem:[%s4183_s4 + $0x3ec] ss:$16 sps:$4 sm:$0xff]  }
 0x1fe   : > { %v1500_v28 = vpop.f32.mrb[3].mxu0  ;;  %v2039_v30 = vadd.f32 %v1785_v21, %v373_v17  ;;  %v1788_v31 = vadd.f32 %v1787_v27, %v1498_v23  ;;  %v1789_v32 = vpop.f32.mrb[3].mxu1 }
 0x1ff   : > { %v3552_v28 = vld [vmem:[%s4183_s4 + $0x3e0] ss:$16 sps:$4 sm:$0xff]   ;;  %v3553_v32 = vld [vmem:[%s4183_s4 + $0x3e8] ss:$16 sps:$4 sm:$0xff]  }
 0x200   : > { %1710 = vmatmul.mubr.bf16.gmra.mrb[108].mxu0 %v3528_v20  ;;  %2103 = vst [vmem:[#allocation2] sm:$0xff] %v2039_v30  ;;  %v2040_v33 = vadd.f32 %v1788_v31, %v374_v26  ;;  %1999 = vmatmul.mubr.bf16.gmra.mrb[108].mxu1 %v3529_v24 }
 0x201   : > { %1717 = vmatprep.mubr.bf16.mxu0 %v3530_v25  ;;  %2006 = vmatprep.mubr.bf16.mxu1 %v3532_v29  ;;  %v381_v25 = vld [vmem:[#allocation2 + $0x40] sm:$0xff] }
 0x202   : > { %2104 = vst [vmem:[#allocation2 + $0x8] sm:$0xff] %v2040_v33  ;;  %v382_v33 = vld [vmem:[#allocation2 + $0x48] sm:$0xff] }
 0x203   : > { %v1503_v34 = vpop.f32.mrb[4].mxu0  ;;  %v1792_v36 = vpop.f32.mrb[4].mxu1 }
 0x204   : > { %v1505_v37 = vpop.f32.mrb[5].mxu0  ;;  %v1793_v39 = vadd.f32 %v1792_v36, %v1503_v34  ;;  %v1794_v40 = vpop.f32.mrb[5].mxu1 }
 0x205   : > { %v1506_v41 = vpop.f32.mrb[6].mxu0  ;;  %v1795_v45 = vpop.f32.mrb[6].mxu1 }
 0x206   : > { %v1508_v46 = vpop.f32.mrb[7].mxu0  ;;  %v2041_v48 = vadd.f32 %v1793_v39, %v375_v35  ;;  %v1796_v49 = vadd.f32 %v1795_v45, %v1506_v41  ;;  %v1797_v50 = vpop.f32.mrb[7].mxu1  ;;  %v383_v41 = vld [vmem:[#allocation2 + $0x50] sm:$0xff] }
 0x208   : > { %1718 = vmatmul.mubr.bf16.gmra.mrb[112].mxu0 %v3534_v38  ;;  %2105 = vst [vmem:[#allocation2 + $0x10] sm:$0xff] %v2041_v48  ;;  %v2042_v51 = vadd.f32 %v1796_v49, %v376_v44  ;;  %2007 = vmatmul.mubr.bf16.gmra.mrb[112].mxu1 %v3535_v42 }
 0x209   : > { %1725 = vmatprep.mubr.bf16.mxu0 %v3536_v43  ;;  %2014 = vmatprep.mubr.bf16.mxu1 %v3538_v47  ;;  %v384_v47 = vld [vmem:[#allocation2 + $0x58] sm:$0xff] }
 0x20a   : > { %2106 = vst [vmem:[#allocation2 + $0x18] sm:$0xff] %v2042_v51 }
 0x20b   : > { %v1511_v52 = vpop.f32.mrb[8].mxu0  ;;  %v1800_v54 = vpop.f32.mrb[8].mxu1 }
 0x20c   : > { %v1513_v55 = vpop.f32.mrb[9].mxu0  ;;  %v1801_v57 = vadd.f32 %v1800_v54, %v1511_v52  ;;  %v1802_v58 = vpop.f32.mrb[9].mxu1 }
 0x20d   : > { %v1514_v59 = vpop.f32.mrb[10].mxu0  ;;  %v1803_v63 = vpop.f32.mrb[10].mxu1  ;;  %v385_v55 = vld [vmem:[#allocation2 + $0x60] sm:$0xff] }
 0x20e   : > { %v1516_v0 = vpop.f32.mrb[11].mxu0  ;;  %v2043_v2 = vadd.f32 %v1801_v57, %v377_v53  ;;  %v1804_v3 = vadd.f32 %v1803_v63, %v1514_v59  ;;  %v1805_v4 = vpop.f32.mrb[11].mxu1 }
 0x210   : > { %1726 = vmatmul.mubr.bf16.gmra.mrb[116].mxu0 %v3540_v56  ;;  %2107 = vst [vmem:[#allocation2 + $0x20] sm:$0xff] %v2043_v2  ;;  %v2044_v5 = vadd.f32 %v1804_v3, %v378_v62  ;;  %2015 = vmatmul.mubr.bf16.gmra.mrb[116].mxu1 %v3541_v60 }
 0x211   : > { %1733 = vmatprep.mubr.bf16.mxu0 %v3542_v61  ;;  %2022 = vmatprep.mubr.bf16.mxu1 %v3544_v1  ;;  %v386_v61 = vld [vmem:[#allocation2 + $0x68] sm:$0xff] }
 0x212   : > { %2108 = vst [vmem:[#allocation2 + $0x28] sm:$0xff] %v2044_v5  ;;  %v387_v5 = vld [vmem:[#allocation2 + $0x70] sm:$0xff] }
 0x213   : > { %v1519_v6 = vpop.f32.mrb[12].mxu0  ;;  %v1808_v8 = vpop.f32.mrb[12].mxu1 }
 0x214   : > { %v1521_v9 = vpop.f32.mrb[13].mxu0  ;;  %v1809_v11 = vadd.f32 %v1808_v8, %v1519_v6  ;;  %v1810_v12 = vpop.f32.mrb[13].mxu1 }
 0x215   : > { %v1522_v13 = vpop.f32.mrb[14].mxu0  ;;  %v1811_v17 = vpop.f32.mrb[14].mxu1 }
 0x216   : > { %v1524_v18 = vpop.f32.mrb[15].mxu0  ;;  %v2045_v20 = vadd.f32 %v1809_v11, %v379_v7  ;;  %v1812_v21 = vadd.f32 %v1811_v17, %v1522_v13  ;;  %v1813_v22 = vpop.f32.mrb[15].mxu1  ;;  %v388_v11 = vld [vmem:[#allocation2 + $0x78] sm:$0xff] }
 0x218   : > { %1734 = vmatmul.mubr.bf16.gmra.mrb[120].mxu0 %v3546_v10  ;;  %2109 = vst [vmem:[#allocation2 + $0x30] sm:$0xff] %v2045_v20  ;;  %v2046_v23 = vadd.f32 %v1812_v21, %v380_v16  ;;  %2023 = vmatmul.mubr.bf16.gmra.mrb[120].mxu1 %v3547_v14 }
 0x219   : > { %1741 = vmatprep.mubr.bf16.mxu0 %v3548_v15  ;;  %2030 = vmatprep.mubr.bf16.mxu1 %v3550_v19  ;;  %v389_v19 = vld [vmem:[#allocation2 + $0x80] sm:$0xff] }
 0x21a   : > { %2110 = vst [vmem:[#allocation2 + $0x38] sm:$0xff] %v2046_v23 }
 0x21b   : > { %v1527_v24 = vpop.f32.mrb[16].mxu0  ;;  %v1816_v26 = vpop.f32.mrb[16].mxu1 }
 0x21c   : > { %v1529_v27 = vpop.f32.mrb[17].mxu0  ;;  %v1817_v29 = vadd.f32 %v1816_v26, %v1527_v24  ;;  %v1818_v30 = vpop.f32.mrb[17].mxu1 }
 0x21d   : > { %v1530_v31 = vpop.f32.mrb[18].mxu0  ;;  %v1819_v34 = vpop.f32.mrb[18].mxu1 }
 0x21e   : > { %v1532_v35 = vpop.f32.mrb[19].mxu0  ;;  %v2047_v36 = vadd.f32 %v1817_v29, %v381_v25  ;;  %v1820_v37 = vadd.f32 %v1819_v34, %v1530_v31  ;;  %v1821_v38 = vpop.f32.mrb[19].mxu1  ;;  %v390_v25 = vld [vmem:[#allocation2 + $0x88] sm:$0xff] }
 0x220   : > { %1742 = vmatmul.mubr.bf16.gmra.mrb[124].mxu0 %v3552_v28  ;;  %2111 = vst [vmem:[#allocation2 + $0x40] sm:$0xff] %v2047_v36  ;;  %v2048_v39 = vadd.f32 %v1820_v37, %v382_v33  ;;  %2031 = vmatmul.mubr.bf16.gmra.mrb[124].mxu1 %v3553_v32  ;;  %v391_v33 = vld [vmem:[#allocation2 + $0x90] sm:$0xff] }
 0x222   : > { %2112 = vst [vmem:[#allocation2 + $0x48] sm:$0xff] %v2048_v39  ;;  %v392_v39 = vld [vmem:[#allocation2 + $0x98] sm:$0xff] }
 0x223   : > { %v1535_v40 = vpop.f32.mrb[20].mxu0  ;;  %v1824_v42 = vpop.f32.mrb[20].mxu1 }
 0x224   : > { %v1537_v43 = vpop.f32.mrb[21].mxu0  ;;  %v1825_v44 = vadd.f32 %v1824_v42, %v1535_v40  ;;  %v1826_v45 = vpop.f32.mrb[21].mxu1 }
 0x225   : > { %v1538_v46 = vpop.f32.mrb[22].mxu0  ;;  %v1827_v48 = vpop.f32.mrb[22].mxu1 }
 0x226   : > { %v1540_v49 = vpop.f32.mrb[23].mxu0  ;;  %v2049_v50 = vadd.f32 %v1825_v44, %v383_v41  ;;  %v1828_v51 = vadd.f32 %v1827_v48, %v1538_v46  ;;  %v1829_v52 = vpop.f32.mrb[23].mxu1 }
 0x228   : > { %2113 = vst [vmem:[#allocation2 + $0x50] sm:$0xff] %v2049_v50  ;;  %v2050_v53 = vadd.f32 %v1828_v51, %v384_v47  ;;  %v393_v47 = vld [vmem:[#allocation2 + $0xa0] sm:$0xff] }
 0x22a   : > { %2114 = vst [vmem:[#allocation2 + $0x58] sm:$0xff] %v2050_v53  ;;  %v394_v53 = vld [vmem:[#allocation2 + $0xa8] sm:$0xff] }
 0x22b   : > { %v1543_v54 = vpop.f32.mrb[24].mxu0  ;;  %v1832_v56 = vpop.f32.mrb[24].mxu1 }
 0x22c   : > { %v1545_v57 = vpop.f32.mrb[25].mxu0  ;;  %v1833_v58 = vadd.f32 %v1832_v56, %v1543_v54  ;;  %v1834_v59 = vpop.f32.mrb[25].mxu1 }
 0x22d   : > { %v1546_v60 = vpop.f32.mrb[26].mxu0  ;;  %v1835_v62 = vpop.f32.mrb[26].mxu1 }
 0x22e   : > { %v1548_v63 = vpop.f32.mrb[27].mxu0  ;;  %v2051_v0 = vadd.f32 %v1833_v58, %v385_v55  ;;  %v1836_v1 = vadd.f32 %v1835_v62, %v1546_v60  ;;  %v1837_v2 = vpop.f32.mrb[27].mxu1 }
 0x230   : > { %2115 = vst [vmem:[#allocation2 + $0x60] sm:$0xff] %v2051_v0  ;;  %v2052_v3 = vadd.f32 %v1836_v1, %v386_v61  ;;  %v395_v61 = vld [vmem:[#allocation2 + $0xb0] sm:$0xff] }
 0x232   : > { %2116 = vst [vmem:[#allocation2 + $0x68] sm:$0xff] %v2052_v3  ;;  %v396_v3 = vld [vmem:[#allocation2 + $0xb8] sm:$0xff] }
 0x233   : > { %v1551_v4 = vpop.f32.mrb[28].mxu0  ;;  %v1840_v6 = vpop.f32.mrb[28].mxu1 }
 0x234   : > { %v1553_v7 = vpop.f32.mrb[29].mxu0  ;;  %v1841_v8 = vadd.f32 %v1840_v6, %v1551_v4  ;;  %v1842_v9 = vpop.f32.mrb[29].mxu1 }
 0x235   : > { %v1554_v10 = vpop.f32.mrb[30].mxu0  ;;  %v1843_v12 = vpop.f32.mrb[30].mxu1 }
 0x236   : > { %v1556_v13 = vpop.f32.mrb[31].mxu0  ;;  %v2053_v14 = vadd.f32 %v1841_v8, %v387_v5  ;;  %v1844_v15 = vadd.f32 %v1843_v12, %v1554_v10  ;;  %v1845_v16 = vpop.f32.mrb[31].mxu1 }
 0x238   : > { %2117 = vst [vmem:[#allocation2 + $0x70] sm:$0xff] %v2053_v14  ;;  %v2054_v17 = vadd.f32 %v1844_v15, %v388_v11  ;;  %v397_v11 = vld [vmem:[#allocation2 + $0xc0] sm:$0xff] }
 0x23a   : > { %2118 = vst [vmem:[#allocation2 + $0x78] sm:$0xff] %v2054_v17  ;;  %v398_v17 = vld [vmem:[#allocation2 + $0xc8] sm:$0xff] }
 0x23b   : > { %v1559_v18 = vpop.f32.mrb[32].mxu0  ;;  %v1848_v20 = vpop.f32.mrb[32].mxu1 }
 0x23c   : > { %v1561_v21 = vpop.f32.mrb[33].mxu0  ;;  %v1849_v22 = vadd.f32 %v1848_v20, %v1559_v18  ;;  %v1850_v23 = vpop.f32.mrb[33].mxu1 }
 0x23d   : > { %v1562_v24 = vpop.f32.mrb[34].mxu0  ;;  %v1851_v26 = vpop.f32.mrb[34].mxu1 }
 0x23e   : > { %v1564_v27 = vpop.f32.mrb[35].mxu0  ;;  %v2055_v28 = vadd.f32 %v1849_v22, %v389_v19  ;;  %v1852_v29 = vadd.f32 %v1851_v26, %v1562_v24  ;;  %v1853_v30 = vpop.f32.mrb[35].mxu1 }
 0x240   : > { %2119 = vst [vmem:[#allocation2 + $0x80] sm:$0xff] %v2055_v28  ;;  %v2056_v31 = vadd.f32 %v1852_v29, %v390_v25  ;;  %v399_v25 = vld [vmem:[#allocation2 + $0xd0] sm:$0xff] }
 0x242   : > { %2120 = vst [vmem:[#allocation2 + $0x88] sm:$0xff] %v2056_v31  ;;  %v400_v31 = vld [vmem:[#allocation2 + $0xd8] sm:$0xff] }
 0x243   : > { %v1567_v32 = vpop.f32.mrb[36].mxu0  ;;  %v1856_v34 = vpop.f32.mrb[36].mxu1 }
 0x244   : > { %v1569_v35 = vpop.f32.mrb[37].mxu0  ;;  %v1857_v36 = vadd.f32 %v1856_v34, %v1567_v32  ;;  %v1858_v37 = vpop.f32.mrb[37].mxu1 }
 0x245   : > { %v1570_v38 = vpop.f32.mrb[38].mxu0  ;;  %v1859_v40 = vpop.f32.mrb[38].mxu1 }
 0x246   : > { %v1572_v41 = vpop.f32.mrb[39].mxu0  ;;  %v2057_v42 = vadd.f32 %v1857_v36, %v391_v33  ;;  %v1860_v43 = vadd.f32 %v1859_v40, %v1570_v38  ;;  %v1861_v44 = vpop.f32.mrb[39].mxu1 }
 0x248   : > { %2121 = vst [vmem:[#allocation2 + $0x90] sm:$0xff] %v2057_v42  ;;  %v2058_v45 = vadd.f32 %v1860_v43, %v392_v39  ;;  %v401_v39 = vld [vmem:[#allocation2 + $0xe0] sm:$0xff] }
 0x24a   : > { %2122 = vst [vmem:[#allocation2 + $0x98] sm:$0xff] %v2058_v45  ;;  %v402_v45 = vld [vmem:[#allocation2 + $0xe8] sm:$0xff] }
 0x24b   : > { %v1575_v46 = vpop.f32.mrb[40].mxu0  ;;  %v1864_v48 = vpop.f32.mrb[40].mxu1 }
 0x24c   : > { %v1577_v49 = vpop.f32.mrb[41].mxu0  ;;  %v1865_v50 = vadd.f32 %v1864_v48, %v1575_v46  ;;  %v1866_v51 = vpop.f32.mrb[41].mxu1 }
 0x24d   : > { %v1578_v52 = vpop.f32.mrb[42].mxu0  ;;  %v1867_v54 = vpop.f32.mrb[42].mxu1 }
 0x24e   : > { %v1580_v55 = vpop.f32.mrb[43].mxu0  ;;  %v2059_v56 = vadd.f32 %v1865_v50, %v393_v47  ;;  %v1868_v57 = vadd.f32 %v1867_v54, %v1578_v52  ;;  %v1869_v58 = vpop.f32.mrb[43].mxu1 }
 0x250   : > { %2123 = vst [vmem:[#allocation2 + $0xa0] sm:$0xff] %v2059_v56  ;;  %v2060_v59 = vadd.f32 %v1868_v57, %v394_v53  ;;  %v403_v53 = vld [vmem:[#allocation2 + $0xf0] sm:$0xff] }
 0x252   : > { %2124 = vst [vmem:[#allocation2 + $0xa8] sm:$0xff] %v2060_v59  ;;  %v404_v59 = vld [vmem:[#allocation2 + $0xf8] sm:$0xff] }
 0x253   : > { %v1583_v60 = vpop.f32.mrb[44].mxu0  ;;  %v1872_v62 = vpop.f32.mrb[44].mxu1 }
 0x254   : > { %v1585_v63 = vpop.f32.mrb[45].mxu0  ;;  %v1873_v0 = vadd.f32 %v1872_v62, %v1583_v60  ;;  %v1874_v1 = vpop.f32.mrb[45].mxu1 }
 0x255   : > { %v1586_v2 = vpop.f32.mrb[46].mxu0  ;;  %v1875_v4 = vpop.f32.mrb[46].mxu1 }
 0x256   : > { %v1588_v5 = vpop.f32.mrb[47].mxu0  ;;  %v2061_v6 = vadd.f32 %v1873_v0, %v395_v61  ;;  %v1876_v7 = vadd.f32 %v1875_v4, %v1586_v2  ;;  %v1877_v8 = vpop.f32.mrb[47].mxu1 }
 0x258   : > { %2125 = vst [vmem:[#allocation2 + $0xb0] sm:$0xff] %v2061_v6  ;;  %v2062_v9 = vadd.f32 %v1876_v7, %v396_v3  ;;  %v405_v3 = vld [vmem:[#allocation2 + $0x100] sm:$0xff] }
 0x25a   : > { %2126 = vst [vmem:[#allocation2 + $0xb8] sm:$0xff] %v2062_v9  ;;  %v406_v9 = vld [vmem:[#allocation2 + $0x108] sm:$0xff] }
 0x25b   : > { %v1591_v10 = vpop.f32.mrb[48].mxu0  ;;  %v1880_v12 = vpop.f32.mrb[48].mxu1 }
 0x25c   : > { %v1593_v13 = vpop.f32.mrb[49].mxu0  ;;  %v1881_v14 = vadd.f32 %v1880_v12, %v1591_v10  ;;  %v1882_v15 = vpop.f32.mrb[49].mxu1 }
 0x25d   : > { %v1594_v16 = vpop.f32.mrb[50].mxu0  ;;  %v1883_v18 = vpop.f32.mrb[50].mxu1 }
 0x25e   : > { %v1596_v19 = vpop.f32.mrb[51].mxu0  ;;  %v2063_v20 = vadd.f32 %v1881_v14, %v397_v11  ;;  %v1884_v21 = vadd.f32 %v1883_v18, %v1594_v16  ;;  %v1885_v22 = vpop.f32.mrb[51].mxu1 }
 0x260   : > { %2127 = vst [vmem:[#allocation2 + $0xc0] sm:$0xff] %v2063_v20  ;;  %v2064_v23 = vadd.f32 %v1884_v21, %v398_v17  ;;  %v407_v17 = vld [vmem:[#allocation2 + $0x110] sm:$0xff] }
 0x262   : > { %2128 = vst [vmem:[#allocation2 + $0xc8] sm:$0xff] %v2064_v23  ;;  %v408_v23 = vld [vmem:[#allocation2 + $0x118] sm:$0xff] }
 0x263   : > { %v1599_v24 = vpop.f32.mrb[52].mxu0  ;;  %v1888_v26 = vpop.f32.mrb[52].mxu1 }
 0x264   : > { %v1601_v27 = vpop.f32.mrb[53].mxu0  ;;  %v1889_v28 = vadd.f32 %v1888_v26, %v1599_v24  ;;  %v1890_v29 = vpop.f32.mrb[53].mxu1 }
 0x265   : > { %v1602_v30 = vpop.f32.mrb[54].mxu0  ;;  %v1891_v32 = vpop.f32.mrb[54].mxu1 }
 0x266   : > { %v1604_v33 = vpop.f32.mrb[55].mxu0  ;;  %v2065_v34 = vadd.f32 %v1889_v28, %v399_v25  ;;  %v1892_v35 = vadd.f32 %v1891_v32, %v1602_v30  ;;  %v1893_v36 = vpop.f32.mrb[55].mxu1 }
 0x268   : > { %2129 = vst [vmem:[#allocation2 + $0xd0] sm:$0xff] %v2065_v34  ;;  %v2066_v37 = vadd.f32 %v1892_v35, %v400_v31  ;;  %v409_v31 = vld [vmem:[#allocation2 + $0x120] sm:$0xff] }
 0x26a   : > { %2130 = vst [vmem:[#allocation2 + $0xd8] sm:$0xff] %v2066_v37  ;;  %v410_v37 = vld [vmem:[#allocation2 + $0x128] sm:$0xff] }
 0x26b   : > { %v1607_v38 = vpop.f32.mrb[56].mxu0  ;;  %v1896_v40 = vpop.f32.mrb[56].mxu1 }
 0x26c   : > { %v1609_v41 = vpop.f32.mrb[57].mxu0  ;;  %v1897_v42 = vadd.f32 %v1896_v40, %v1607_v38  ;;  %v1898_v43 = vpop.f32.mrb[57].mxu1 }
 0x26d   : > { %v1610_v44 = vpop.f32.mrb[58].mxu0  ;;  %v1899_v46 = vpop.f32.mrb[58].mxu1 }
 0x26e   : > { %v1612_v47 = vpop.f32.mrb[59].mxu0  ;;  %v2067_v48 = vadd.f32 %v1897_v42, %v401_v39  ;;  %v1900_v49 = vadd.f32 %v1899_v46, %v1610_v44  ;;  %v1901_v50 = vpop.f32.mrb[59].mxu1 }
 0x270   : > { %2131 = vst [vmem:[#allocation2 + $0xe0] sm:$0xff] %v2067_v48  ;;  %v2068_v51 = vadd.f32 %v1900_v49, %v402_v45  ;;  %v411_v45 = vld [vmem:[#allocation2 + $0x130] sm:$0xff] }
 0x272   : > { %2132 = vst [vmem:[#allocation2 + $0xe8] sm:$0xff] %v2068_v51  ;;  %v412_v51 = vld [vmem:[#allocation2 + $0x138] sm:$0xff] }
 0x273   : > { %v1615_v52 = vpop.f32.mrb[60].mxu0  ;;  %v1904_v54 = vpop.f32.mrb[60].mxu1 }
 0x274   : > { %v1617_v55 = vpop.f32.mrb[61].mxu0  ;;  %v1905_v56 = vadd.f32 %v1904_v54, %v1615_v52  ;;  %v1906_v57 = vpop.f32.mrb[61].mxu1 }
 0x275   : > { %v1618_v58 = vpop.f32.mrb[62].mxu0  ;;  %v1907_v60 = vpop.f32.mrb[62].mxu1 }
 0x276   : > { %v1620_v61 = vpop.f32.mrb[63].mxu0  ;;  %v2069_v62 = vadd.f32 %v1905_v56, %v403_v53  ;;  %v1908_v63 = vadd.f32 %v1907_v60, %v1618_v58  ;;  %v1909_v0 = vpop.f32.mrb[63].mxu1 }
 0x278   : > { %2133 = vst [vmem:[#allocation2 + $0xf0] sm:$0xff] %v2069_v62  ;;  %v2070_v1 = vadd.f32 %v1908_v63, %v404_v59  ;;  %v413_v59 = vld [vmem:[#allocation2 + $0x140] sm:$0xff] }
 0x27a   : > { %2134 = vst [vmem:[#allocation2 + $0xf8] sm:$0xff] %v2070_v1  ;;  %v414_v1 = vld [vmem:[#allocation2 + $0x148] sm:$0xff] }
 0x27b   : > { %v1623_v2 = vpop.f32.mrb[64].mxu0  ;;  %v1912_v4 = vpop.f32.mrb[64].mxu1 }
 0x27c   : > { %v1625_v5 = vpop.f32.mrb[65].mxu0  ;;  %v1913_v6 = vadd.f32 %v1912_v4, %v1623_v2  ;;  %v1914_v7 = vpop.f32.mrb[65].mxu1 }
 0x27d   : > { %v1626_v8 = vpop.f32.mrb[66].mxu0  ;;  %v1915_v10 = vpop.f32.mrb[66].mxu1 }
 0x27e   : > { %v1628_v11 = vpop.f32.mrb[67].mxu0  ;;  %v2071_v12 = vadd.f32 %v1913_v6, %v405_v3  ;;  %v1916_v13 = vadd.f32 %v1915_v10, %v1626_v8  ;;  %v1917_v14 = vpop.f32.mrb[67].mxu1 }
 0x280   : > { %2135 = vst [vmem:[#allocation2 + $0x100] sm:$0xff] %v2071_v12  ;;  %v2072_v15 = vadd.f32 %v1916_v13, %v406_v9  ;;  %v415_v9 = vld [vmem:[#allocation2 + $0x150] sm:$0xff] }
 0x282   : > { %2136 = vst [vmem:[#allocation2 + $0x108] sm:$0xff] %v2072_v15  ;;  %v416_v15 = vld [vmem:[#allocation2 + $0x158] sm:$0xff] }
 0x283   : > { %v1631_v16 = vpop.f32.mrb[68].mxu0  ;;  %v1920_v18 = vpop.f32.mrb[68].mxu1 }
 0x284   : > { %v1633_v19 = vpop.f32.mrb[69].mxu0  ;;  %v1921_v20 = vadd.f32 %v1920_v18, %v1631_v16  ;;  %v1922_v21 = vpop.f32.mrb[69].mxu1 }
 0x285   : > { %v1634_v22 = vpop.f32.mrb[70].mxu0  ;;  %v1923_v24 = vpop.f32.mrb[70].mxu1 }
 0x286   : > { %v1636_v25 = vpop.f32.mrb[71].mxu0  ;;  %v2073_v26 = vadd.f32 %v1921_v20, %v407_v17  ;;  %v1924_v27 = vadd.f32 %v1923_v24, %v1634_v22  ;;  %v1925_v28 = vpop.f32.mrb[71].mxu1 }
 0x288   : > { %2137 = vst [vmem:[#allocation2 + $0x110] sm:$0xff] %v2073_v26  ;;  %v2074_v29 = vadd.f32 %v1924_v27, %v408_v23  ;;  %v417_v23 = vld [vmem:[#allocation2 + $0x160] sm:$0xff] }
 0x28a   : > { %2138 = vst [vmem:[#allocation2 + $0x118] sm:$0xff] %v2074_v29  ;;  %v418_v29 = vld [vmem:[#allocation2 + $0x168] sm:$0xff] }
 0x28b   : > { %v1639_v30 = vpop.f32.mrb[72].mxu0  ;;  %v1928_v32 = vpop.f32.mrb[72].mxu1 }
 0x28c   : > { %v1641_v33 = vpop.f32.mrb[73].mxu0  ;;  %v1929_v34 = vadd.f32 %v1928_v32, %v1639_v30  ;;  %v1930_v35 = vpop.f32.mrb[73].mxu1 }
 0x28d   : > { %v1642_v36 = vpop.f32.mrb[74].mxu0  ;;  %v1931_v38 = vpop.f32.mrb[74].mxu1 }
 0x28e   : > { %v1644_v39 = vpop.f32.mrb[75].mxu0  ;;  %v2075_v40 = vadd.f32 %v1929_v34, %v409_v31  ;;  %v1932_v41 = vadd.f32 %v1931_v38, %v1642_v36  ;;  %v1933_v42 = vpop.f32.mrb[75].mxu1 }
 0x290   : > { %2139 = vst [vmem:[#allocation2 + $0x120] sm:$0xff] %v2075_v40  ;;  %v2076_v43 = vadd.f32 %v1932_v41, %v410_v37  ;;  %v419_v37 = vld [vmem:[#allocation2 + $0x170] sm:$0xff] }
 0x292   : > { %2140 = vst [vmem:[#allocation2 + $0x128] sm:$0xff] %v2076_v43  ;;  %v420_v43 = vld [vmem:[#allocation2 + $0x178] sm:$0xff] }
 0x293   : > { %v1647_v44 = vpop.f32.mrb[76].mxu0  ;;  %v1936_v46 = vpop.f32.mrb[76].mxu1 }
 0x294   : > { %v1649_v47 = vpop.f32.mrb[77].mxu0  ;;  %v1937_v48 = vadd.f32 %v1936_v46, %v1647_v44  ;;  %v1938_v49 = vpop.f32.mrb[77].mxu1 }
 0x295   : > { %v1650_v50 = vpop.f32.mrb[78].mxu0  ;;  %v1939_v52 = vpop.f32.mrb[78].mxu1 }
 0x296   : > { %v1652_v53 = vpop.f32.mrb[79].mxu0  ;;  %v2077_v54 = vadd.f32 %v1937_v48, %v411_v45  ;;  %v1940_v55 = vadd.f32 %v1939_v52, %v1650_v50  ;;  %v1941_v56 = vpop.f32.mrb[79].mxu1 }
 0x298   : > { %2141 = vst [vmem:[#allocation2 + $0x130] sm:$0xff] %v2077_v54  ;;  %v2078_v57 = vadd.f32 %v1940_v55, %v412_v51  ;;  %v421_v51 = vld [vmem:[#allocation2 + $0x180] sm:$0xff] }
 0x29a   : > { %2142 = vst [vmem:[#allocation2 + $0x138] sm:$0xff] %v2078_v57  ;;  %v422_v57 = vld [vmem:[#allocation2 + $0x188] sm:$0xff] }
 0x29b   : > { %v1655_v58 = vpop.f32.mrb[80].mxu0  ;;  %v1944_v60 = vpop.f32.mrb[80].mxu1 }
 0x29c   : > { %v1657_v61 = vpop.f32.mrb[81].mxu0  ;;  %v1945_v62 = vadd.f32 %v1944_v60, %v1655_v58  ;;  %v1946_v63 = vpop.f32.mrb[81].mxu1 }
 0x29d   : > { %v1658_v0 = vpop.f32.mrb[82].mxu0  ;;  %v1947_v2 = vpop.f32.mrb[82].mxu1 }
 0x29e   : > { %v1660_v3 = vpop.f32.mrb[83].mxu0  ;;  %v2079_v4 = vadd.f32 %v1945_v62, %v413_v59  ;;  %v1948_v5 = vadd.f32 %v1947_v2, %v1658_v0  ;;  %v1949_v6 = vpop.f32.mrb[83].mxu1 }
 0x2a0   : > { %2143 = vst [vmem:[#allocation2 + $0x140] sm:$0xff] %v2079_v4  ;;  %v2080_v7 = vadd.f32 %v1948_v5, %v414_v1  ;;  %v423_v1 = vld [vmem:[#allocation2 + $0x190] sm:$0xff] }
 0x2a2   : > { %2144 = vst [vmem:[#allocation2 + $0x148] sm:$0xff] %v2080_v7  ;;  %v424_v7 = vld [vmem:[#allocation2 + $0x198] sm:$0xff] }
 0x2a3   : > { %v1663_v8 = vpop.f32.mrb[84].mxu0  ;;  %v1952_v10 = vpop.f32.mrb[84].mxu1 }
 0x2a4   : > { %v1665_v11 = vpop.f32.mrb[85].mxu0  ;;  %v1953_v12 = vadd.f32 %v1952_v10, %v1663_v8  ;;  %v1954_v13 = vpop.f32.mrb[85].mxu1 }
 0x2a5   : > { %v1666_v14 = vpop.f32.mrb[86].mxu0  ;;  %v1955_v16 = vpop.f32.mrb[86].mxu1 }
 0x2a6   : > { %v1668_v17 = vpop.f32.mrb[87].mxu0  ;;  %v2081_v18 = vadd.f32 %v1953_v12, %v415_v9  ;;  %v1956_v19 = vadd.f32 %v1955_v16, %v1666_v14  ;;  %v1957_v20 = vpop.f32.mrb[87].mxu1 }
 0x2a8   : > { %2145 = vst [vmem:[#allocation2 + $0x150] sm:$0xff] %v2081_v18  ;;  %v2082_v21 = vadd.f32 %v1956_v19, %v416_v15  ;;  %v425_v15 = vld [vmem:[#allocation2 + $0x1a0] sm:$0xff] }
 0x2aa   : > { %2146 = vst [vmem:[#allocation2 + $0x158] sm:$0xff] %v2082_v21  ;;  %v426_v21 = vld [vmem:[#allocation2 + $0x1a8] sm:$0xff] }
 0x2ab   : > { %v1671_v22 = vpop.f32.mrb[88].mxu0  ;;  %v1960_v24 = vpop.f32.mrb[88].mxu1 }
 0x2ac   : > { %v1673_v25 = vpop.f32.mrb[89].mxu0  ;;  %v1961_v26 = vadd.f32 %v1960_v24, %v1671_v22  ;;  %v1962_v27 = vpop.f32.mrb[89].mxu1 }
 0x2ad   : > { %v1674_v28 = vpop.f32.mrb[90].mxu0  ;;  %v1963_v30 = vpop.f32.mrb[90].mxu1 }
 0x2ae   : > { %v1676_v31 = vpop.f32.mrb[91].mxu0  ;;  %v2083_v32 = vadd.f32 %v1961_v26, %v417_v23  ;;  %v1964_v33 = vadd.f32 %v1963_v30, %v1674_v28  ;;  %v1965_v34 = vpop.f32.mrb[91].mxu1 }
 0x2b0   : > { %2147 = vst [vmem:[#allocation2 + $0x160] sm:$0xff] %v2083_v32  ;;  %v2084_v35 = vadd.f32 %v1964_v33, %v418_v29  ;;  %v427_v29 = vld [vmem:[#allocation2 + $0x1b0] sm:$0xff] }
 0x2b2   : > { %2148 = vst [vmem:[#allocation2 + $0x168] sm:$0xff] %v2084_v35  ;;  %v428_v35 = vld [vmem:[#allocation2 + $0x1b8] sm:$0xff] }
 0x2b3   : > { %v1679_v36 = vpop.f32.mrb[92].mxu0  ;;  %v1968_v38 = vpop.f32.mrb[92].mxu1 }
 0x2b4   : > { %v1681_v39 = vpop.f32.mrb[93].mxu0  ;;  %v1969_v40 = vadd.f32 %v1968_v38, %v1679_v36  ;;  %v1970_v41 = vpop.f32.mrb[93].mxu1 }
 0x2b5   : > { %v1682_v42 = vpop.f32.mrb[94].mxu0  ;;  %v1971_v44 = vpop.f32.mrb[94].mxu1 }
 0x2b6   : > { %v1684_v45 = vpop.f32.mrb[95].mxu0  ;;  %v2085_v46 = vadd.f32 %v1969_v40, %v419_v37  ;;  %v1972_v47 = vadd.f32 %v1971_v44, %v1682_v42  ;;  %v1973_v48 = vpop.f32.mrb[95].mxu1 }
 0x2b8   : > { %2149 = vst [vmem:[#allocation2 + $0x170] sm:$0xff] %v2085_v46  ;;  %v2086_v49 = vadd.f32 %v1972_v47, %v420_v43  ;;  %v429_v43 = vld [vmem:[#allocation2 + $0x1c0] sm:$0xff] }
 0x2ba   : > { %2150 = vst [vmem:[#allocation2 + $0x178] sm:$0xff] %v2086_v49  ;;  %v430_v49 = vld [vmem:[#allocation2 + $0x1c8] sm:$0xff] }
 0x2bb   : > { %v1687_v50 = vpop.f32.mrb[96].mxu0  ;;  %v1976_v52 = vpop.f32.mrb[96].mxu1 }
 0x2bc   : > { %v1689_v53 = vpop.f32.mrb[97].mxu0  ;;  %v1977_v54 = vadd.f32 %v1976_v52, %v1687_v50  ;;  %v1978_v55 = vpop.f32.mrb[97].mxu1 }
 0x2bd   : > { %v1690_v56 = vpop.f32.mrb[98].mxu0  ;;  %v1979_v58 = vpop.f32.mrb[98].mxu1 }
 0x2be   : > { %v1692_v59 = vpop.f32.mrb[99].mxu0  ;;  %v2087_v60 = vadd.f32 %v1977_v54, %v421_v51  ;;  %v1980_v61 = vadd.f32 %v1979_v58, %v1690_v56  ;;  %v1981_v62 = vpop.f32.mrb[99].mxu1 }
 0x2c0   : > { %2151 = vst [vmem:[#allocation2 + $0x180] sm:$0xff] %v2087_v60  ;;  %v2088_v63 = vadd.f32 %v1980_v61, %v422_v57  ;;  %v431_v57 = vld [vmem:[#allocation2 + $0x1d0] sm:$0xff] }
 0x2c2   : > { %2152 = vst [vmem:[#allocation2 + $0x188] sm:$0xff] %v2088_v63  ;;  %v432_v63 = vld [vmem:[#allocation2 + $0x1d8] sm:$0xff] }
 0x2c3   : > { %v1695_v0 = vpop.f32.mrb[100].mxu0  ;;  %v1984_v2 = vpop.f32.mrb[100].mxu1 }
 0x2c4   : > { %v1697_v3 = vpop.f32.mrb[101].mxu0  ;;  %v1985_v4 = vadd.f32 %v1984_v2, %v1695_v0  ;;  %v1986_v5 = vpop.f32.mrb[101].mxu1 }
 0x2c5   : > { %v1698_v6 = vpop.f32.mrb[102].mxu0  ;;  %v1987_v8 = vpop.f32.mrb[102].mxu1 }
 0x2c6   : > { %v1700_v9 = vpop.f32.mrb[103].mxu0  ;;  %v2089_v10 = vadd.f32 %v1985_v4, %v423_v1  ;;  %v1988_v11 = vadd.f32 %v1987_v8, %v1698_v6  ;;  %v1989_v12 = vpop.f32.mrb[103].mxu1 }
 0x2c8   : > { %2153 = vst [vmem:[#allocation2 + $0x190] sm:$0xff] %v2089_v10  ;;  %v2090_v13 = vadd.f32 %v1988_v11, %v424_v7  ;;  %v433_v7 = vld [vmem:[#allocation2 + $0x1e0] sm:$0xff] }
 0x2ca   : > { %2154 = vst [vmem:[#allocation2 + $0x198] sm:$0xff] %v2090_v13  ;;  %v434_v13 = vld [vmem:[#allocation2 + $0x1e8] sm:$0xff] }
 0x2cb   : > { %v1703_v14 = vpop.f32.mrb[104].mxu0  ;;  %v1992_v16 = vpop.f32.mrb[104].mxu1 }
 0x2cc   : > { %v1705_v17 = vpop.f32.mrb[105].mxu0  ;;  %v1993_v18 = vadd.f32 %v1992_v16, %v1703_v14  ;;  %v1994_v19 = vpop.f32.mrb[105].mxu1 }
 0x2cd   : > { %v1706_v20 = vpop.f32.mrb[106].mxu0  ;;  %v1995_v22 = vpop.f32.mrb[106].mxu1 }
 0x2ce   : > { %v1708_v23 = vpop.f32.mrb[107].mxu0  ;;  %v2091_v24 = vadd.f32 %v1993_v18, %v425_v15  ;;  %v1996_v25 = vadd.f32 %v1995_v22, %v1706_v20  ;;  %v1997_v26 = vpop.f32.mrb[107].mxu1 }
 0x2d0   : > { %2155 = vst [vmem:[#allocation2 + $0x1a0] sm:$0xff] %v2091_v24  ;;  %v2092_v27 = vadd.f32 %v1996_v25, %v426_v21  ;;  %v435_v21 = vld [vmem:[#allocation2 + $0x1f0] sm:$0xff] }
 0x2d2   : > { %2156 = vst [vmem:[#allocation2 + $0x1a8] sm:$0xff] %v2092_v27  ;;  %v436_v27 = vld [vmem:[#allocation2 + $0x1f8] sm:$0xff] }
 0x2d3   : > { %v1711_v28 = vpop.f32.mrb[108].mxu0  ;;  %v2000_v30 = vpop.f32.mrb[108].mxu1 }
 0x2d4   : > { %v1713_v31 = vpop.f32.mrb[109].mxu0  ;;  %v2001_v32 = vadd.f32 %v2000_v30, %v1711_v28  ;;  %v2002_v33 = vpop.f32.mrb[109].mxu1 }
 0x2d5   : > { %v1714_v34 = vpop.f32.mrb[110].mxu0  ;;  %v2003_v36 = vpop.f32.mrb[110].mxu1 }
 0x2d6   : > { %v1716_v37 = vpop.f32.mrb[111].mxu0  ;;  %v2093_v38 = vadd.f32 %v2001_v32, %v427_v29  ;;  %v2004_v39 = vadd.f32 %v2003_v36, %v1714_v34  ;;  %v2005_v40 = vpop.f32.mrb[111].mxu1  ;;  %v3554_v34 = vld [vmem:[#allocation8] sm:$0xff] (!%p3015_p10)   ;;  %v3556_v36 = vld [vmem:[#allocation8 + $0x10] sm:$0xff] (!%p3015_p10)  }
 0x2d7   : > { %3073 = vmatprep.subr.bf16.mxu0 (!%p3015_p10), %v3554_v34  ;;  %3153 = vmatprep.subr.bf16.mxu1 (!%p3015_p10), %v3554_v34  ;;  %v3557_v37 = vld [vmem:[#allocation8 + $0x18] sm:$0xff] (!%p3015_p10)   ;;  %v2203_v40 = vld [vmem:[#allocation2 + $0x100] sm:$0xff] (!%p3015_p10) }
 0x2d8   : > { %2157 = vst [vmem:[#allocation2 + $0x1b0] sm:$0xff] %v2093_v38  ;;  %v2094_v41 = vadd.f32 %v2004_v39, %v428_v35  ;;  %v3555_v35 = vld [vmem:[#allocation8 + $0x8] sm:$0xff] (!%p3015_p10)   ;;  %3074 = vmatpush3.bf16.msra.mxu0 (!%p3015_p10), %v3554_v34  ;;  %3161 = vmatpush3.bf16.msra.mxu1 (!%p3015_p10), %v3554_v34  ;;  %v2171_v38 = vld [vmem:[#allocation2] sm:$0xff] (!%p3015_p10)  ;;  %v2221_v34 = vld [vmem:[#allocation2 + $0x190] sm:$0xff] (!%p3015_p10) }
 0x2d9   : > { %3075 = vmatprep.subr.bf16.mxu0 (!%p3015_p10), %v3555_v35  ;;  %3154 = vmatprep.subr.bf16.mxu1 (!%p3015_p10), %v3555_v35  ;;  %v2172_v39 = vld [vmem:[#allocation2 + $0x8] sm:$0xff] (!%p3015_p10) }
 0x2da   : > { %2158 = vst [vmem:[#allocation2 + $0x1b8] sm:$0xff] %v2094_v41  ;;  %v2235_v41 = vpack.c.bf16 (!%p3015_p10), %v2172_v39, %v2171_v38  ;;  %v2223_v38 = vld [vmem:[#allocation2 + $0x1a0] sm:$0xff] (!%p3015_p10)  ;;  %v2224_v39 = vld [vmem:[#allocation2 + $0x1a8] sm:$0xff] (!%p3015_p10) }
 0x2db   : > { %v1719_v42 = vpop.f32.mrb[112].mxu0  ;;  %v2008_v44 = vpop.f32.mrb[112].mxu1 }
 0x2dc   : > { %v1721_v45 = vpop.f32.mrb[113].mxu0  ;;  %v2009_v46 = vadd.f32 %v2008_v44, %v1719_v42  ;;  %v2010_v47 = vpop.f32.mrb[113].mxu1  ;;  %3076 = vmatpush3.bf16.msra.mxu0 (!%p3015_p10), %v3555_v35  ;;  %3162 = vmatpush3.bf16.msra.mxu1 (!%p3015_p10), %v3555_v35  ;;  %v2204_v42 = vld [vmem:[#allocation2 + $0x108] sm:$0xff] (!%p3015_p10)  ;;  %v3558_v44 = vld [vmem:[#allocation8 + $0x20] sm:$0xff] (!%p3015_p10)   ;;  %v2222_v35 = vld [vmem:[#allocation2 + $0x198] sm:$0xff] (!%p3015_p10) }
 0x2dd   : > { %v1722_v48 = vpop.f32.mrb[114].mxu0  ;;  %v2011_v50 = vpop.f32.mrb[114].mxu1  ;;  %3077 = vmatprep.subr.bf16.mxu0 (!%p3015_p10), %v3556_v36  ;;  %3155 = vmatprep.subr.bf16.mxu1 (!%p3015_p10), %v3556_v36  ;;  %v3559_v45 = vld [vmem:[#allocation8 + $0x28] sm:$0xff] (!%p3015_p10)   ;;  %v3561_v47 = vld [vmem:[#allocation8 + $0x38] sm:$0xff] (!%p3015_p10)  }
 0x2de   : > { %v1724_v51 = vpop.f32.mrb[115].mxu0  ;;  %v2095_v52 = vadd.f32 %v2009_v46, %v429_v43  ;;  %v2012_v53 = vadd.f32 %v2011_v50, %v1722_v48  ;;  %v2013_v54 = vpop.f32.mrb[115].mxu1  ;;  %v2251_v43 = vpack.c.bf16 (!%p3015_p10), %v2204_v42, %v2203_v40  ;;  %3089 = vmatprep.mubr.bf16.mxu0 (!%p3015_p10), %v2235_v41  ;;  %v3560_v46 = vld [vmem:[#allocation8 + $0x30] sm:$0xff] (!%p3015_p10)   ;;  %v2260_v41 = vpack.c.bf16 (!%p3015_p10), %v2222_v35, %v2221_v34 }
 0x2df   : > { %v2173_v48 = vld [vmem:[#allocation2 + $0x10] sm:$0xff] (!%p3015_p10)  ;;  %v2206_v51 = vld [vmem:[#allocation2 + $0x118] sm:$0xff] (!%p3015_p10)  ;;  %v2207_v54 = vld [vmem:[#allocation2 + $0x120] sm:$0xff] (!%p3015_p10) }
 0x2e0   : > { %2159 = vst [vmem:[#allocation2 + $0x1c0] sm:$0xff] %v2095_v52  ;;  %v2096_v55 = vadd.f32 %v2012_v53, %v430_v49  ;;  %3078 = vmatpush3.bf16.msra.mxu0 (!%p3015_p10), %v3556_v36  ;;  %3163 = vmatpush3.bf16.msra.mxu1 (!%p3015_p10), %v3556_v36  ;;  %v2174_v49 = vld [vmem:[#allocation2 + $0x18] sm:$0xff] (!%p3015_p10)  ;;  %v2205_v50 = vld [vmem:[#allocation2 + $0x110] sm:$0xff] (!%p3015_p10)  ;;  %v2175_v52 = vld [vmem:[#allocation2 + $0x20] sm:$0xff] (!%p3015_p10) }
 0x2e1   : > { %3079 = vmatprep.subr.bf16.mxu0 (!%p3015_p10), %v3557_v37  ;;  %3156 = vmatprep.subr.bf16.mxu1 (!%p3015_p10), %v3557_v37  ;;  %v2176_v53 = vld [vmem:[#allocation2 + $0x28] sm:$0xff] (!%p3015_p10)  ;;  %v2191_v36 = vld [vmem:[#allocation2 + $0xa0] sm:$0xff] (!%p3015_p10) }
 0x2e2   : > { %2160 = vst [vmem:[#allocation2 + $0x1c8] sm:$0xff] %v2096_v55  ;;  %3121 = vmatprep.mubr.bf16.mxu1 (!%p3015_p10), %v2251_v43  ;;  %v2208_v55 = vld [vmem:[#allocation2 + $0x128] sm:$0xff] (!%p3015_p10)  ;;  %v2261_v43 = vpack.c.bf16 (!%p3015_p10), %v2224_v39, %v2223_v38 }
 0x2e3   : > { %v1727_v56 = vpop.f32.mrb[116].mxu0  ;;  %v2016_v58 = vpop.f32.mrb[116].mxu1 }
 0x2e4   : > { %v1729_v59 = vpop.f32.mrb[117].mxu0  ;;  %v2017_v60 = vadd.f32 %v2016_v58, %v1727_v56  ;;  %v2018_v61 = vpop.f32.mrb[117].mxu1  ;;  %3080 = vmatpush3.bf16.msra.mxu0 (!%p3015_p10), %v3557_v37  ;;  %3164 = vmatpush3.bf16.msra.mxu1 (!%p3015_p10), %v3557_v37  ;;  %v2236_v56 = vpack.c.bf16 (!%p3015_p10), %v2174_v49, %v2173_v48  ;;  %v2237_v58 = vpack.c.bf16 (!%p3015_p10), %v2176_v53, %v2175_v52  ;;  %v2192_v37 = vld [vmem:[#allocation2 + $0xa8] sm:$0xff] (!%p3015_p10)  ;;  %v2195_v48 = vld [vmem:[#allocation2 + $0xc0] sm:$0xff] (!%p3015_p10) }
 0x2e5   : > { %v1730_v62 = vpop.f32.mrb[118].mxu0  ;;  %v2019_v0 = vpop.f32.mrb[118].mxu1  ;;  %3081 = vmatprep.subr.bf16.mxu0 (!%p3015_p10), %v3558_v44  ;;  %3157 = vmatprep.subr.bf16.mxu1 (!%p3015_p10), %v3558_v44  ;;  %v2253_v59 = vpack.c.bf16 (!%p3015_p10), %v2208_v55, %v2207_v54  ;;  %v2178_v61 = vld [vmem:[#allocation2 + $0x38] sm:$0xff] (!%p3015_p10)  ;;  %v2245_v42 = vpack.c.bf16 (!%p3015_p10), %v2192_v37, %v2191_v36  ;;  %v2196_v49 = vld [vmem:[#allocation2 + $0xc8] sm:$0xff] (!%p3015_p10) }
 0x2e6   : > { %v1732_v1 = vpop.f32.mrb[119].mxu0  ;;  %v2097_v2 = vadd.f32 %v2017_v60, %v431_v57  ;;  %v2020_v3 = vadd.f32 %v2019_v0, %v1730_v62  ;;  %v2021_v4 = vpop.f32.mrb[119].mxu1  ;;  %v2252_v57 = vpack.c.bf16 (!%p3015_p10), %v2206_v51, %v2205_v50  ;;  %v2177_v60 = vld [vmem:[#allocation2 + $0x30] sm:$0xff] (!%p3015_p10)  ;;  %v2179_v0 = vld [vmem:[#allocation2 + $0x40] sm:$0xff] (!%p3015_p10)  ;;  %v2247_v54 = vpack.c.bf16 (!%p3015_p10), %v2196_v49, %v2195_v48 }
 0x2e7   : > { %v2209_v62 = vld [vmem:[#allocation2 + $0x130] sm:$0xff] (!%p3015_p10)  ;;  %v2180_v1 = vld [vmem:[#allocation2 + $0x48] sm:$0xff] (!%p3015_p10)  ;;  %v2238_v4 = vpack.c.bf16 (!%p3015_p10), %v2178_v61, %v2177_v60  ;;  %v2227_v50 = vld [vmem:[#allocation2 + $0x1c0] sm:$0xff] (!%p3015_p10) }
 0x2e8   : > { %2161 = vst [vmem:[#allocation2 + $0x1d0] sm:$0xff] %v2097_v2  ;;  %v2098_v5 = vadd.f32 %v2020_v3, %v432_v63  ;;  %3082 = vmatpush3.bf16.msra.mxu0 (!%p3015_p10), %v3558_v44  ;;  %3165 = vmatpush3.bf16.msra.mxu1 (!%p3015_p10), %v3558_v44  ;;  %v2210_v63 = vld [vmem:[#allocation2 + $0x138] sm:$0xff] (!%p3015_p10)  ;;  %v2211_v2 = vld [vmem:[#allocation2 + $0x140] sm:$0xff] (!%p3015_p10)  ;;  %v2212_v3 = vld [vmem:[#allocation2 + $0x148] sm:$0xff] (!%p3015_p10) }
 0x2e9   : > { %3083 = vmatprep.subr.bf16.mxu0 (!%p3015_p10), %v3559_v45  ;;  %3158 = vmatprep.subr.bf16.mxu1 (!%p3015_p10), %v3559_v45  ;;  %v2193_v44 = vld [vmem:[#allocation2 + $0xb0] sm:$0xff] (!%p3015_p10)  ;;  %v2228_v51 = vld [vmem:[#allocation2 + $0x1c8] sm:$0xff] (!%p3015_p10)  ;;  %v2199_v60 = vld [vmem:[#allocation2 + $0xe0] sm:$0xff] (!%p3015_p10) }
 0x2ea   : > { %2162 = vst [vmem:[#allocation2 + $0x1d8] sm:$0xff] %v2098_v5  ;;  %v2254_v5 = vpack.c.bf16 (!%p3015_p10), %v2210_v63, %v2209_v62  ;;  %v2263_v55 = vpack.c.bf16 (!%p3015_p10), %v2228_v51, %v2227_v50  ;;  %v2200_v61 = vld [vmem:[#allocation2 + $0xe8] sm:$0xff] (!%p3015_p10) }
 0x2eb   : > { %v1735_v6 = vpop.f32.mrb[120].mxu0  ;;  %v2024_v8 = vpop.f32.mrb[120].mxu1 }
 0x2ec   : > { %v1737_v9 = vpop.f32.mrb[121].mxu0  ;;  %v2025_v10 = vadd.f32 %v2024_v8, %v1735_v6  ;;  %v2026_v11 = vpop.f32.mrb[121].mxu1  ;;  %3084 = vmatpush3.bf16.msra.mxu0 (!%p3015_p10), %v3559_v45  ;;  %3166 = vmatpush3.bf16.msra.mxu1 (!%p3015_p10), %v3559_v45  ;;  %v2239_v6 = vpack.c.bf16 (!%p3015_p10), %v2180_v1, %v2179_v0  ;;  %v2181_v8 = vld [vmem:[#allocation2 + $0x50] sm:$0xff] (!%p3015_p10)  ;;  %v2194_v45 = vld [vmem:[#allocation2 + $0xb8] sm:$0xff] (!%p3015_p10) }
 0x2ed   : > { %v1738_v12 = vpop.f32.mrb[122].mxu0  ;;  %v2027_v14 = vpop.f32.mrb[122].mxu1  ;;  %3085 = vmatprep.subr.bf16.mxu0 (!%p3015_p10), %v3560_v46  ;;  %3159 = vmatprep.subr.bf16.mxu1 (!%p3015_p10), %v3560_v46  ;;  %v2182_v9 = vld [vmem:[#allocation2 + $0x58] sm:$0xff] (!%p3015_p10)  ;;  %v2246_v52 = vpack.c.bf16 (!%p3015_p10), %v2194_v45, %v2193_v44 }
 0x2ee   : > { %v1740_v15 = vpop.f32.mrb[123].mxu0  ;;  %v2099_v16 = vadd.f32 %v2025_v10, %v433_v7  ;;  %v2028_v17 = vadd.f32 %v2027_v14, %v1738_v12  ;;  %v2029_v18 = vpop.f32.mrb[123].mxu1  ;;  %v2255_v7 = vpack.c.bf16 (!%p3015_p10), %v2212_v3, %v2211_v2  ;;  %v2213_v10 = vld [vmem:[#allocation2 + $0x150] sm:$0xff] (!%p3015_p10)  ;;  %v2214_v11 = vld [vmem:[#allocation2 + $0x158] sm:$0xff] (!%p3015_p10)  ;;  %v2183_v12 = vld [vmem:[#allocation2 + $0x60] sm:$0xff] (!%p3015_p10)  ;;  %v2249_v2 = vpack.c.bf16 (!%p3015_p10), %v2200_v61, %v2199_v60 }
 0x2ef   : > { %v2215_v14 = vld [vmem:[#allocation2 + $0x160] sm:$0xff] (!%p3015_p10)  ;;  %v2216_v15 = vld [vmem:[#allocation2 + $0x168] sm:$0xff] (!%p3015_p10) }
 0x2f0   : > { %2163 = vst [vmem:[#allocation2 + $0x1e0] sm:$0xff] %v2099_v16  ;;  %v2100_v19 = vadd.f32 %v2028_v17, %v434_v13  ;;  %3086 = vmatpush3.bf16.msra.mxu0 (!%p3015_p10), %v3560_v46  ;;  %3167 = vmatpush3.bf16.msra.mxu1 (!%p3015_p10), %v3560_v46  ;;  %v2184_v13 = vld [vmem:[#allocation2 + $0x68] sm:$0xff] (!%p3015_p10)  ;;  %v2240_v16 = vpack.c.bf16 (!%p3015_p10), %v2182_v9, %v2181_v8  ;;  %v2225_v46 = vld [vmem:[#allocation2 + $0x1b0] sm:$0xff] (!%p3015_p10) }
 0x2f1   : > { %3087 = vmatprep.subr.bf16.mxu0 (!%p3015_p10), %v3561_v47  ;;  %3160 = vmatprep.subr.bf16.mxu1 (!%p3015_p10), %v3561_v47  ;;  %v2256_v17 = vpack.c.bf16 (!%p3015_p10), %v2214_v11, %v2213_v10  ;;  %v2241_v18 = vpack.c.bf16 (!%p3015_p10), %v2184_v13, %v2183_v12  ;;  %v4468_v10 = vld [vmem:[#allocation9] ss:$0 sm:$0xff] (!%p3015_p10) }
 0x2f2   : > { %2164 = vst [vmem:[#allocation2 + $0x1e8] sm:$0xff] %v2100_v19  ;;  %v2257_v19 = vpack.c.bf16 (!%p3015_p10), %v2216_v15, %v2215_v14 }
 0x2f3   : > { %v1743_v20 = vpop.f32.mrb[124].mxu0  ;;  %v2032_v22 = vpop.f32.mrb[124].mxu1 }
 0x2f4   : > { %v1745_v23 = vpop.f32.mrb[125].mxu0  ;;  %v2033_v24 = vadd.f32 %v2032_v22, %v1743_v20  ;;  %v2034_v25 = vpop.f32.mrb[125].mxu1  ;;  %2170 = sbr.rel (%p3015_p10) target bundleno = 1033 (0x409), region = 60  ;;  %3088 = vmatpush3.bf16.msra.mxu0 (!%p3015_p10), %v3561_v47  ;;  %3168 = vmatpush3.bf16.msra.mxu1 (!%p3015_p10), %v3561_v47  ;;  %v2185_v20 = vld [vmem:[#allocation2 + $0x70] sm:$0xff] (!%p3015_p10)  ;;  %v2226_v47 = vld [vmem:[#allocation2 + $0x1b8] sm:$0xff] (!%p3015_p10) }
 0x2f5   : > { %v1746_v26 = vpop.f32.mrb[126].mxu0  ;;  %v2035_v28 = vpop.f32.mrb[126].mxu1  ;;  %v2217_v22 = vld [vmem:[#allocation2 + $0x170] sm:$0xff] (!%p3015_p10)  ;;  %v2218_v23 = vld [vmem:[#allocation2 + $0x178] sm:$0xff] (!%p3015_p10)  ;;  %v2188_v25 = vld [vmem:[#allocation2 + $0x88] sm:$0xff] (!%p3015_p10)  ;;  %v2262_v53 = vpack.c.bf16 (!%p3015_p10), %v2226_v47, %v2225_v46 }
 0x2f6   : > { %v1748_v29 = vpop.f32.mrb[127].mxu0  ;;  %v2101_v30 = vadd.f32 %v2033_v24, %v435_v21  ;;  %v2036_v31 = vadd.f32 %v2035_v28, %v1746_v26  ;;  %v2037_v32 = vpop.f32.mrb[127].mxu1  ;;  %v2186_v21 = vld [vmem:[#allocation2 + $0x78] sm:$0xff] (!%p3015_p10)  ;;  %v2187_v24 = vld [vmem:[#allocation2 + $0x80] sm:$0xff] (!%p3015_p10) }
 0x2f7   : > { %3090 = vmatmul.mubr.bf16.vlgmr.msra.gmra.mrb[0].mxu0 (!%p3015_p10), %v2236_v56  ;;  %3122 = vmatmul.mubr.bf16.vlgmr.msra.gmra.mrb[0].mxu1 (!%p3015_p10), %v2252_v57  ;;  %v2219_v26 = vld [vmem:[#allocation2 + $0x180] sm:$0xff] (!%p3015_p10)  ;;  %v2242_v28 = vpack.c.bf16 (!%p3015_p10), %v2186_v21, %v2185_v20  ;;  %v2258_v29 = vpack.c.bf16 (!%p3015_p10), %v2218_v23, %v2217_v22  ;;  %v2189_v32 = vld [vmem:[#allocation2 + $0x90] sm:$0xff] (!%p3015_p10)  ;;  %v2198_v57 = vld [vmem:[#allocation2 + $0xd8] sm:$0xff] (!%p3015_p10) }
 0x2f8   : > { %2165 = vst [vmem:[#allocation2 + $0x1f0] sm:$0xff] %v2101_v30  ;;  %v2102_v33 = vadd.f32 %v2036_v31, %v436_v27  ;;  %3093 = vmatprep.mubr.bf16.mxu0 (!%p3015_p10), %v2237_v58  ;;  %3125 = vmatprep.mubr.bf16.mxu1 (!%p3015_p10), %v2253_v59  ;;  %v2220_v27 = vld [vmem:[#allocation2 + $0x188] sm:$0xff] (!%p3015_p10)  ;;  %v2243_v30 = vpack.c.bf16 (!%p3015_p10), %v2188_v25, %v2187_v24  ;;  %v2197_v56 = vld [vmem:[#allocation2 + $0xd0] sm:$0xff] (!%p3015_p10)  ;;  %v2230_v59 = vld [vmem:[#allocation2 + $0x1d8] sm:$0xff] (!%p3015_p10) }
 0x2f9   : > { %v2259_v31 = vpack.c.bf16 (!%p3015_p10), %v2220_v27, %v2219_v26  ;;  %v2229_v58 = vld [vmem:[#allocation2 + $0x1d0] sm:$0xff] (!%p3015_p10)  ;;  %v2231_v62 = vld [vmem:[#allocation2 + $0x1e0] sm:$0xff] (!%p3015_p10)  ;;  %v2232_v63 = vld [vmem:[#allocation2 + $0x1e8] sm:$0xff] (!%p3015_p10)  ;;  %v2248_v0 = vpack.c.bf16 (!%p3015_p10), %v2198_v57, %v2197_v56 }
 0x2fa   : > { %2166 = vst [vmem:[#allocation2 + $0x1f8] sm:$0xff] %v2102_v33  ;;  %v2190_v33 = vld [vmem:[#allocation2 + $0x98] sm:$0xff] (!%p3015_p10)  ;;  %v2264_v1 = vpack.c.bf16 (!%p3015_p10), %v2230_v59, %v2229_v58  ;;  %v2265_v3 = vpack.c.bf16 (!%p3015_p10), %v2232_v63, %v2231_v62 }
 0x2fb   : > { %v2244_v40 = vpack.c.bf16 %v2190_v33, %v2189_v32 }
 0x2ff   : > { %3094 = vmatmul.mubr.bf16.gmra.mrb[4].mxu0 %v2238_v4  ;;  %3126 = vmatmul.mubr.bf16.gmra.mrb[4].mxu1 %v2254_v5  ;;  %v2201_v4 = vld [vmem:[#allocation2 + $0xf0] sm:$0xff]  ;;  %v2202_v5 = vld [vmem:[#allocation2 + $0xf8] sm:$0xff] }
 0x300   : > { %3097 = vmatprep.mubr.bf16.mxu0 %v2239_v6  ;;  %3129 = vmatprep.mubr.bf16.mxu1 %v2255_v7  ;;  %v2233_v6 = vld [vmem:[#allocation2 + $0x1f0] sm:$0xff]  ;;  %v2250_v8 = vpack.c.bf16 %v2202_v5, %v2201_v4 }
 0x301   : > { %v2234_v7 = vld [vmem:[#allocation2 + $0x1f8] sm:$0xff] }
 0x302   : > { %v2266_v9 = vpack.c.bf16 %v2234_v7, %v2233_v6 }
 0x307   : > { %3098 = vmatmul.mubr.bf16.gmra.mrb[8].mxu0 %v2240_v16  ;;  %3130 = vmatmul.mubr.bf16.gmra.mrb[8].mxu1 %v2256_v17 }
 0x308   : > { %3101 = vmatprep.mubr.bf16.mxu0 %v2241_v18  ;;  %3133 = vmatprep.mubr.bf16.mxu1 %v2257_v19 }
 0x30f   : > { %3102 = vmatmul.mubr.bf16.gmra.mrb[12].mxu0 %v2242_v28  ;;  %3134 = vmatmul.mubr.bf16.gmra.mrb[12].mxu1 %v2258_v29 }
 0x310   : > { %3105 = vmatprep.mubr.bf16.mxu0 %v2243_v30  ;;  %3137 = vmatprep.mubr.bf16.mxu1 %v2259_v31 }
 0x317   : > { %3106 = vmatmul.mubr.bf16.gmra.mrb[16].mxu0 %v2244_v40  ;;  %3138 = vmatmul.mubr.bf16.gmra.mrb[16].mxu1 %v2260_v41 }
 0x318   : > { %3109 = vmatprep.mubr.bf16.mxu0 %v2245_v42  ;;  %3141 = vmatprep.mubr.bf16.mxu1 %v2261_v43 }
 0x31f   : > { %3110 = vmatmul.mubr.bf16.gmra.mrb[20].mxu0 %v2246_v52  ;;  %3142 = vmatmul.mubr.bf16.gmra.mrb[20].mxu1 %v2262_v53 }
 0x320   : > { %3113 = vmatprep.mubr.bf16.mxu0 %v2247_v54  ;;  %3145 = vmatprep.mubr.bf16.mxu1 %v2263_v55 }
 0x327   : > { %3114 = vmatmul.mubr.bf16.gmra.mrb[24].mxu0 %v2248_v0  ;;  %3146 = vmatmul.mubr.bf16.gmra.mrb[24].mxu1 %v2264_v1 }
 0x328   : > { %3117 = vmatprep.mubr.bf16.mxu0 %v2249_v2  ;;  %3149 = vmatprep.mubr.bf16.mxu1 %v2265_v3 }
 0x32f   : > { %3118 = vmatmul.mubr.bf16.gmra.mrb[28].mxu0 %v2250_v8  ;;  %3150 = vmatmul.mubr.bf16.gmra.mrb[28].mxu1 %v2266_v9 }
 0x3ca   : > { %v3091_v11 = vpop.f32.mrb[0].mxu0  ;;  %v3123_v12 = vpop.f32.mrb[0].mxu1 }
 0x3cb   : > { %v2381_v13 = vadd.f32 %v3091_v11, %v4468_v10  ;;  %v2509_v14 = vadd.f32 %v3123_v12, %v4468_v10  ;;  %v2372_v15 = vpop.f32.mrb[1].mxu0  ;;  %v2500_v16 = vpop.f32.mrb[1].mxu1 }
 0x3cc   : > { %v2373_v17 = vadd.f32 %v4468_v10, %v2372_v15  ;;  %v2501_v18 = vadd.f32 %v4468_v10, %v2500_v16  ;;  %v3092_v19 = vpop.f32.mrb[2].mxu0  ;;  %v3124_v20 = vpop.f32.mrb[2].mxu1 }
 0x3cd   : > { %2629 = vst [vmem:[%s4208_s11 + $0x10] sm:$0xff] %v2381_v13  ;;  %2661 = vst [vmem:[%s4208_s11 + $0x110] sm:$0xff] %v2509_v14  ;;  %v2384_v21 = vadd.f32 %v3092_v19, %v4468_v10  ;;  %v2512_v22 = vadd.f32 %v3124_v20, %v4468_v10  ;;  %v2375_v23 = vpop.f32.mrb[3].mxu0  ;;  %v2503_v24 = vpop.f32.mrb[3].mxu1 }
 0x3ce   : > { %2627 = vst [vmem:[%s4208_s11] sm:$0xff] %v2373_v17  ;;  %2659 = vst [vmem:[%s4208_s11 + $0x100] sm:$0xff] %v2501_v18  ;;  %v2376_v25 = vadd.f32 %v4468_v10, %v2375_v23  ;;  %v2504_v26 = vadd.f32 %v4468_v10, %v2503_v24 }
 0x3cf   : > { %2630 = vst [vmem:[%s4208_s11 + $0x18] sm:$0xff] %v2384_v21  ;;  %2662 = vst [vmem:[%s4208_s11 + $0x118] sm:$0xff] %v2512_v22 }
 0x3d0   : > { %2628 = vst [vmem:[%s4208_s11 + $0x8] sm:$0xff] %v2376_v25  ;;  %2660 = vst [vmem:[%s4208_s11 + $0x108] sm:$0xff] %v2504_v26 }
 0x3d2   : > { %v3095_v27 = vpop.f32.mrb[4].mxu0  ;;  %v3127_v28 = vpop.f32.mrb[4].mxu1 }
 0x3d3   : > { %v2397_v29 = vadd.f32 %v3095_v27, %v4468_v10  ;;  %v2525_v30 = vadd.f32 %v3127_v28, %v4468_v10  ;;  %v2388_v31 = vpop.f32.mrb[5].mxu0  ;;  %v2516_v32 = vpop.f32.mrb[5].mxu1 }
 0x3d4   : > { %v2389_v33 = vadd.f32 %v4468_v10, %v2388_v31  ;;  %v2517_v34 = vadd.f32 %v4468_v10, %v2516_v32  ;;  %v3096_v35 = vpop.f32.mrb[6].mxu0  ;;  %v3128_v36 = vpop.f32.mrb[6].mxu1 }
 0x3d5   : > { %2633 = vst [vmem:[%s4208_s11 + $0x30] sm:$0xff] %v2397_v29  ;;  %2665 = vst [vmem:[%s4208_s11 + $0x130] sm:$0xff] %v2525_v30  ;;  %v2400_v37 = vadd.f32 %v3096_v35, %v4468_v10  ;;  %v2528_v38 = vadd.f32 %v3128_v36, %v4468_v10  ;;  %v2391_v39 = vpop.f32.mrb[7].mxu0  ;;  %v2519_v40 = vpop.f32.mrb[7].mxu1 }
 0x3d6   : > { %2631 = vst [vmem:[%s4208_s11 + $0x20] sm:$0xff] %v2389_v33  ;;  %2663 = vst [vmem:[%s4208_s11 + $0x120] sm:$0xff] %v2517_v34  ;;  %v2392_v41 = vadd.f32 %v4468_v10, %v2391_v39  ;;  %v2520_v42 = vadd.f32 %v4468_v10, %v2519_v40 }
 0x3d7   : > { %2634 = vst [vmem:[%s4208_s11 + $0x38] sm:$0xff] %v2400_v37  ;;  %2666 = vst [vmem:[%s4208_s11 + $0x138] sm:$0xff] %v2528_v38 }
 0x3d8   : > { %2632 = vst [vmem:[%s4208_s11 + $0x28] sm:$0xff] %v2392_v41  ;;  %2664 = vst [vmem:[%s4208_s11 + $0x128] sm:$0xff] %v2520_v42 }
 0x3da   : > { %v3099_v43 = vpop.f32.mrb[8].mxu0  ;;  %v3131_v44 = vpop.f32.mrb[8].mxu1 }
 0x3db   : > { %v2413_v45 = vadd.f32 %v3099_v43, %v4468_v10  ;;  %v2541_v46 = vadd.f32 %v3131_v44, %v4468_v10  ;;  %v2404_v47 = vpop.f32.mrb[9].mxu0  ;;  %v2532_v48 = vpop.f32.mrb[9].mxu1 }
 0x3dc   : > { %v2405_v49 = vadd.f32 %v4468_v10, %v2404_v47  ;;  %v2533_v50 = vadd.f32 %v4468_v10, %v2532_v48  ;;  %v3100_v51 = vpop.f32.mrb[10].mxu0  ;;  %v3132_v52 = vpop.f32.mrb[10].mxu1 }
 0x3dd   : > { %2637 = vst [vmem:[%s4208_s11 + $0x50] sm:$0xff] %v2413_v45  ;;  %2669 = vst [vmem:[%s4208_s11 + $0x150] sm:$0xff] %v2541_v46  ;;  %v2416_v53 = vadd.f32 %v3100_v51, %v4468_v10  ;;  %v2544_v54 = vadd.f32 %v3132_v52, %v4468_v10  ;;  %v2407_v55 = vpop.f32.mrb[11].mxu0  ;;  %v2535_v56 = vpop.f32.mrb[11].mxu1 }
 0x3de   : > { %2635 = vst [vmem:[%s4208_s11 + $0x40] sm:$0xff] %v2405_v49  ;;  %2667 = vst [vmem:[%s4208_s11 + $0x140] sm:$0xff] %v2533_v50  ;;  %v2408_v57 = vadd.f32 %v4468_v10, %v2407_v55  ;;  %v2536_v58 = vadd.f32 %v4468_v10, %v2535_v56 }
 0x3df   : > { %2638 = vst [vmem:[%s4208_s11 + $0x58] sm:$0xff] %v2416_v53  ;;  %2670 = vst [vmem:[%s4208_s11 + $0x158] sm:$0xff] %v2544_v54 }
 0x3e0   : > { %2636 = vst [vmem:[%s4208_s11 + $0x48] sm:$0xff] %v2408_v57  ;;  %2668 = vst [vmem:[%s4208_s11 + $0x148] sm:$0xff] %v2536_v58 }
 0x3e2   : > { %v3103_v59 = vpop.f32.mrb[12].mxu0  ;;  %v3135_v60 = vpop.f32.mrb[12].mxu1 }
 0x3e3   : > { %v2429_v61 = vadd.f32 %v3103_v59, %v4468_v10  ;;  %v2557_v62 = vadd.f32 %v3135_v60, %v4468_v10  ;;  %v2420_v63 = vpop.f32.mrb[13].mxu0  ;;  %v2548_v0 = vpop.f32.mrb[13].mxu1 }
 0x3e4   : > { %v2421_v1 = vadd.f32 %v4468_v10, %v2420_v63  ;;  %v2549_v2 = vadd.f32 %v4468_v10, %v2548_v0  ;;  %v3104_v3 = vpop.f32.mrb[14].mxu0  ;;  %v3136_v4 = vpop.f32.mrb[14].mxu1 }
 0x3e5   : > { %2641 = vst [vmem:[%s4208_s11 + $0x70] sm:$0xff] %v2429_v61  ;;  %2673 = vst [vmem:[%s4208_s11 + $0x170] sm:$0xff] %v2557_v62  ;;  %v2432_v5 = vadd.f32 %v3104_v3, %v4468_v10  ;;  %v2560_v6 = vadd.f32 %v3136_v4, %v4468_v10  ;;  %v2423_v7 = vpop.f32.mrb[15].mxu0  ;;  %v2551_v8 = vpop.f32.mrb[15].mxu1 }
 0x3e6   : > { %2639 = vst [vmem:[%s4208_s11 + $0x60] sm:$0xff] %v2421_v1  ;;  %2671 = vst [vmem:[%s4208_s11 + $0x160] sm:$0xff] %v2549_v2  ;;  %v2424_v9 = vadd.f32 %v4468_v10, %v2423_v7  ;;  %v2552_v11 = vadd.f32 %v4468_v10, %v2551_v8 }
 0x3e7   : > { %2642 = vst [vmem:[%s4208_s11 + $0x78] sm:$0xff] %v2432_v5  ;;  %2674 = vst [vmem:[%s4208_s11 + $0x178] sm:$0xff] %v2560_v6 }
 0x3e8   : > { %2640 = vst [vmem:[%s4208_s11 + $0x68] sm:$0xff] %v2424_v9  ;;  %2672 = vst [vmem:[%s4208_s11 + $0x168] sm:$0xff] %v2552_v11 }
 0x3ea   : > { %v3107_v12 = vpop.f32.mrb[16].mxu0  ;;  %v3139_v13 = vpop.f32.mrb[16].mxu1 }
 0x3eb   : > { %v2445_v14 = vadd.f32 %v3107_v12, %v4468_v10  ;;  %v2573_v15 = vadd.f32 %v3139_v13, %v4468_v10  ;;  %v2436_v16 = vpop.f32.mrb[17].mxu0  ;;  %v2564_v17 = vpop.f32.mrb[17].mxu1 }
 0x3ec   : > { %v2437_v18 = vadd.f32 %v4468_v10, %v2436_v16  ;;  %v2565_v19 = vadd.f32 %v4468_v10, %v2564_v17  ;;  %v3108_v20 = vpop.f32.mrb[18].mxu0  ;;  %v3140_v21 = vpop.f32.mrb[18].mxu1 }
 0x3ed   : > { %2645 = vst [vmem:[%s4208_s11 + $0x90] sm:$0xff] %v2445_v14  ;;  %2677 = vst [vmem:[%s4208_s11 + $0x190] sm:$0xff] %v2573_v15  ;;  %v2448_v22 = vadd.f32 %v3108_v20, %v4468_v10  ;;  %v2576_v23 = vadd.f32 %v3140_v21, %v4468_v10  ;;  %v2439_v24 = vpop.f32.mrb[19].mxu0  ;;  %v2567_v25 = vpop.f32.mrb[19].mxu1 }
 0x3ee   : > { %2643 = vst [vmem:[%s4208_s11 + $0x80] sm:$0xff] %v2437_v18  ;;  %2675 = vst [vmem:[%s4208_s11 + $0x180] sm:$0xff] %v2565_v19  ;;  %v2440_v26 = vadd.f32 %v4468_v10, %v2439_v24  ;;  %v2568_v27 = vadd.f32 %v4468_v10, %v2567_v25 }
 0x3ef   : > { %2646 = vst [vmem:[%s4208_s11 + $0x98] sm:$0xff] %v2448_v22  ;;  %2678 = vst [vmem:[%s4208_s11 + $0x198] sm:$0xff] %v2576_v23 }
 0x3f0   : > { %2644 = vst [vmem:[%s4208_s11 + $0x88] sm:$0xff] %v2440_v26  ;;  %2676 = vst [vmem:[%s4208_s11 + $0x188] sm:$0xff] %v2568_v27 }
 0x3f2   : > { %v3111_v28 = vpop.f32.mrb[20].mxu0  ;;  %v3143_v29 = vpop.f32.mrb[20].mxu1 }
 0x3f3   : > { %v2461_v30 = vadd.f32 %v3111_v28, %v4468_v10  ;;  %v2589_v31 = vadd.f32 %v3143_v29, %v4468_v10  ;;  %v2452_v32 = vpop.f32.mrb[21].mxu0  ;;  %v2580_v33 = vpop.f32.mrb[21].mxu1 }
 0x3f4   : > { %v2453_v34 = vadd.f32 %v4468_v10, %v2452_v32  ;;  %v2581_v35 = vadd.f32 %v4468_v10, %v2580_v33  ;;  %v3112_v36 = vpop.f32.mrb[22].mxu0  ;;  %v3144_v37 = vpop.f32.mrb[22].mxu1 }
 0x3f5   : > { %2649 = vst [vmem:[%s4208_s11 + $0xb0] sm:$0xff] %v2461_v30  ;;  %2681 = vst [vmem:[%s4208_s11 + $0x1b0] sm:$0xff] %v2589_v31  ;;  %v2464_v38 = vadd.f32 %v3112_v36, %v4468_v10  ;;  %v2592_v39 = vadd.f32 %v3144_v37, %v4468_v10  ;;  %v2455_v40 = vpop.f32.mrb[23].mxu0  ;;  %v2583_v41 = vpop.f32.mrb[23].mxu1 }
 0x3f6   : > { %2647 = vst [vmem:[%s4208_s11 + $0xa0] sm:$0xff] %v2453_v34  ;;  %2679 = vst [vmem:[%s4208_s11 + $0x1a0] sm:$0xff] %v2581_v35  ;;  %v2456_v42 = vadd.f32 %v4468_v10, %v2455_v40  ;;  %v2584_v43 = vadd.f32 %v4468_v10, %v2583_v41 }
 0x3f7   : > { %2650 = vst [vmem:[%s4208_s11 + $0xb8] sm:$0xff] %v2464_v38  ;;  %2682 = vst [vmem:[%s4208_s11 + $0x1b8] sm:$0xff] %v2592_v39 }
 0x3f8   : > { %2648 = vst [vmem:[%s4208_s11 + $0xa8] sm:$0xff] %v2456_v42  ;;  %2680 = vst [vmem:[%s4208_s11 + $0x1a8] sm:$0xff] %v2584_v43 }
 0x3fa   : > { %v3115_v44 = vpop.f32.mrb[24].mxu0  ;;  %v3147_v45 = vpop.f32.mrb[24].mxu1 }
 0x3fb   : > { %v2477_v46 = vadd.f32 %v3115_v44, %v4468_v10  ;;  %v2605_v47 = vadd.f32 %v3147_v45, %v4468_v10  ;;  %v2468_v48 = vpop.f32.mrb[25].mxu0  ;;  %v2596_v49 = vpop.f32.mrb[25].mxu1 }
 0x3fc   : > { %v2469_v50 = vadd.f32 %v4468_v10, %v2468_v48  ;;  %v2597_v51 = vadd.f32 %v4468_v10, %v2596_v49  ;;  %v3116_v52 = vpop.f32.mrb[26].mxu0  ;;  %v3148_v53 = vpop.f32.mrb[26].mxu1 }
 0x3fd   : > { %2653 = vst [vmem:[%s4208_s11 + $0xd0] sm:$0xff] %v2477_v46  ;;  %2685 = vst [vmem:[%s4208_s11 + $0x1d0] sm:$0xff] %v2605_v47  ;;  %v2480_v54 = vadd.f32 %v3116_v52, %v4468_v10  ;;  %v2608_v55 = vadd.f32 %v3148_v53, %v4468_v10  ;;  %v2471_v56 = vpop.f32.mrb[27].mxu0  ;;  %v2599_v57 = vpop.f32.mrb[27].mxu1 }
 0x3fe   : > { %2651 = vst [vmem:[%s4208_s11 + $0xc0] sm:$0xff] %v2469_v50  ;;  %2683 = vst [vmem:[%s4208_s11 + $0x1c0] sm:$0xff] %v2597_v51  ;;  %v2472_v58 = vadd.f32 %v4468_v10, %v2471_v56  ;;  %v2600_v59 = vadd.f32 %v4468_v10, %v2599_v57 }
 0x3ff   : > { %2654 = vst [vmem:[%s4208_s11 + $0xd8] sm:$0xff] %v2480_v54  ;;  %2686 = vst [vmem:[%s4208_s11 + $0x1d8] sm:$0xff] %v2608_v55 }
 0x400   : > { %2652 = vst [vmem:[%s4208_s11 + $0xc8] sm:$0xff] %v2472_v58  ;;  %2684 = vst [vmem:[%s4208_s11 + $0x1c8] sm:$0xff] %v2600_v59 }
 0x402   : > { %v3119_v60 = vpop.f32.mrb[28].mxu0  ;;  %v3151_v61 = vpop.f32.mrb[28].mxu1 }
 0x403   : > { %v2493_v62 = vadd.f32 %v3119_v60, %v4468_v10  ;;  %v2621_v63 = vadd.f32 %v3151_v61, %v4468_v10  ;;  %v2484_v0 = vpop.f32.mrb[29].mxu0  ;;  %v2612_v1 = vpop.f32.mrb[29].mxu1 }
 0x404   : > { %v2485_v2 = vadd.f32 %v4468_v10, %v2484_v0  ;;  %v2613_v3 = vadd.f32 %v4468_v10, %v2612_v1  ;;  %v3120_v4 = vpop.f32.mrb[30].mxu0  ;;  %v3152_v5 = vpop.f32.mrb[30].mxu1 }
 0x405   : > { %2657 = vst [vmem:[%s4208_s11 + $0xf0] sm:$0xff] %v2493_v62  ;;  %2689 = vst [vmem:[%s4208_s11 + $0x1f0] sm:$0xff] %v2621_v63  ;;  %v2496_v6 = vadd.f32 %v3120_v4, %v4468_v10  ;;  %v2624_v7 = vadd.f32 %v3152_v5, %v4468_v10  ;;  %v2487_v8 = vpop.f32.mrb[31].mxu0  ;;  %v2615_v9 = vpop.f32.mrb[31].mxu1 }
 0x406   : > { %2655 = vst [vmem:[%s4208_s11 + $0xe0] sm:$0xff] %v2485_v2  ;;  %2687 = vst [vmem:[%s4208_s11 + $0x1e0] sm:$0xff] %v2613_v3  ;;  %v2488_v11 = vadd.f32 %v4468_v10, %v2487_v8  ;;  %v2616_v12 = vadd.f32 %v4468_v10, %v2615_v9 }
 0x407   : > { %2658 = vst [vmem:[%s4208_s11 + $0xf8] sm:$0xff] %v2496_v6  ;;  %2690 = vst [vmem:[%s4208_s11 + $0x1f8] sm:$0xff] %v2624_v7 }
 0x408   : > { %2656 = vst [vmem:[%s4208_s11 + $0xe8] sm:$0xff] %v2488_v11  ;;  %2688 = vst [vmem:[%s4208_s11 + $0x1e8] sm:$0xff] %v2616_v12 }
 0x409 PF: > { %s4749_s30 = sld [smem:[#allocation20_spill]]  ;;  %s4751_s14 = sld [smem:[#allocation22_spill]] }
 0x40a   : > { %s4752_s2 = sld [smem:[#allocation29_spill]]  ;;  %s2705_s4 = sshll.u32 %s4208_s11, 4  ;;  %s4605_s4 = int_to_ptr.vmem [resolvable:$true] %s2705_s4 }
 0x40b   : > { %s4609_s3 = scalar_lea.sflag [#allocation5], %s297_s18  ;;  %s3678_s27 = scalar_lea.vmem %s4605_s4, 8192 }
 0x40c   : > { %p3679_p0 = scmp.ne.s32.totalorder %s4605_s4, %s3678_s27  ;;  %s3849_s5 = smov [#allocation11]  }
 0x40d   : > { %s3682_s10 = sshll.u32 %s3849_s5, 4  ;;  %s3683_s10 = int_to_ptr.vmem [resolvable:$false] %s3682_s10 }
 0x40e   : > { %s3684_s13 = scalar_lea.vmem %s3683_s10, 16384  ;;  %p3685_p12 = scmp.lt.s32.totalorder %s4605_s4, %s3683_s10 }
 0x40f   : > { %s3032_s12 = sshll.u32 %s4749_s30, 13  ;;  %p4753_p9 = scmp.ne.s32.totalorder %s4751_s14, 0 }
 0x410   : > { %s4602_s21 = scalar_lea.hbm %s4752_s2, %s3032_s12  ;;  %p3686_p5 = scmp.lt.s32.totalorder %s3684_s13, %s3678_s27 }
 0x411   : > { %p3680_p13 = pnand %p3679_p0, %p4753_p9 }
 0x412   : > { %p3687_p4 = por %p3686_p5, %p3685_p12 }
 0x413   : > { %p3681_p8 = pneg %p3680_p13 }
 0x415   : > { %p3688_p7 = pnand %p3687_p4, %p3681_p8 }
 0x417   : > { %3691 = shalt.err (!%p3688_p7)
}
 0x418   : > { %s3692_s6 = scalar_lea.hbm %s4602_s21, 8192  ;;  %s3696_s11 = scalar_lea.hbm %s4752_s2, 16384 }
 0x419   : > { %p3693_p6 = scmp.ne.s32.totalorder %s4602_s21, %s3692_s6  ;;  %p3697_p3 = scmp.lt.u32.totalorder %s4602_s21, %s4752_s2 }
 0x41a   : > { %p3698_p11 = scmp.lt.u32.totalorder %s3696_s11, %s3692_s6  ;;  %p3700_p0 = scmp.lt.u32.totalorder %s3692_s6, %s4602_s21 }
 0x41b   : > { %p3694_p1 = pnand %p3693_p6, %p4753_p9 }
 0x41c   : > { %p3699_p10 = por %p3698_p11, %p3697_p3 }
 0x41d   : > { %p3695_p2 = pneg %p3694_p1 }
 0x41e   : > { %p3701_p13 = por %p3700_p0, %p3699_p10 }
 0x420   : > { %p3702_p8 = pnand %p3701_p13, %p3695_p2 }
 0x422   : > { %3705 = shalt.err (!%p3702_p8)
}
 0x423   : > { %s3850_s30 = smov 128   ;;  %s3851_s24 = smov 8  }
 0x424   : > { %3181 = dma.vmem_to_hbm [thread:$0]  (%p4753_p9), %s4605_s4, 8192, %s4602_s21, %s4609_s3, %s3850_s30, %s3850_s30, %s3851_s24  }
 0x425 PF: > { %s4754_s12 = sld [smem:[#allocation17_spill]]  ;;  %s4755_s15 = sld [smem:[#allocation23_spill]] }
 0x426   : > { %p3206_p12 = scmp.ge.s32.totalorder %s3836_s28, 2 }
 0x42b   : > { %s2720_s0 = sand.u32 1, %s4754_s12   ;;  %p4756_p5 = scmp.ne.s32.totalorder %s4755_s15, 0 }
 0x42c   : > { %s2721_s27 = scalar_lea.sflag [#allocation5], %s2720_s0 }
 0x42d   : > { %p3198_p4 = pnand %p3206_p12, %p4756_p5 }
 0x42f   : > { %3779 = dma.done.wait (!%p3198_p4), %s2721_s27, 8192  }
 0x430   : > { %3781 = vsyncadd (!%p3198_p4), %s2721_s27, 4294959104  ;;  %s24_s28 = sadd.s32 1, %s3836_s28   ;;  %s4758_s15 = sld [smem:[#allocation18_spill]] }
 0x431   : > { %p4638_p7 = scmp.ge.s32.totalorder %s24_s28, 6   ;;  %s4759_s14 = sld [smem:[#allocation21_spill]] }
 0x432   : > { %s4760_s4 = sld [smem:[#allocation24_spill]]  ;;  %s4761_s27 = sld [smem:[#allocation25_spill]] }
 0x433   : > { %s4762_s16 = smov %s3792_s17  ;;  %s4763_s17 = smov %s4074_s25 }
 0x434   : > { %s4764_s18 = smov %s3800_s19  ;;  %s4765_s19 = smov %s3804_s20 }
 0x435   : > { %s4766_s20 = smov %s4130_s8  ;;  %s4767_s21 = smov %s3812_s22 }
 0x436   : > { %s4768_s22 = smov %s3816_s23  ;;  %s4769_s23 = smov %s4077_s9 }
 0x437   : > { %s4770_s24 = smov %s3828_s26  ;;  %s4771_s25 = smov %s4759_s14 }
 0x438   : > { %s4772_s26 = smov %s4760_s4  ;;  %23 = sbr.rel (!%p4638_p7) target bundleno = 18 (0x12), region = 110 }
 0x43f   :  { %2726 = vsyncpa [#allocation4], 1 }
 0x440   :  { %2728 = vsyncpa [#allocation4 + $0x1], 1 }
 0x441   :  { %2729 = vsyncpa [#allocation7], 1 }
 0x442   :  { %2731 = vsyncpa [#allocation7 + $0x1], 1 }
 0x443   :  { %2732 = vsyncpa [#allocation10], 1 }
 0x444   :  { %2733 = vsyncpa [#allocation5], 1 }
 0x445   :  { %2735 = vsyncpa [#allocation5 + $0x1], 1 }

</bundles_post_ra>
